<compile_context>
chip_gen: v7x
topology: tpu7x:2x2x1
jax: 0.10.0
libtpu: 0.0.40
codegen_flags: <defaults>
</compile_context>

<pallas_src>
import jax
import jax.numpy as jnp
from jax.experimental import pallas as pl
from jax.experimental.pallas import tpu as pltpu


def _round_up(x, m):
    return (x + m - 1) // m * m


# ---------------------------------------------------------------------------
# Fused kernel: one image (grid step) per invocation.
# ---------------------------------------------------------------------------
def _bottleneck_kernel(x_ref, w1_ref, b1_ref, w2_ref, b2_ref,
                       w3_ref, b3_ref, wsk_ref, bsk_ref, o_ref, pad_ref):
    """x_ref: (1,H,W,Cin_p) bf16; w*: bf16 weights with BN scale folded in;
    b*: (1,C) f32 biases; w2_ref: (9*Cp, Cp) taps folded into K;
    o_ref: (1,H,W,Cout_p) f32; pad_ref: (H+2,W+2,Cp) f32 VMEM scratch."""
    _, h, w, cin = x_ref.shape
    cp = w1_ref.shape[1]
    cout = w3_ref.shape[1]
    p = h * w

    x = x_ref[0].reshape(p, cin)                              # (P, Cin_p) bf16

    # skip branch: residual = relu(x @ Wsk + bsk)   (shares the x tile)
    res = jnp.dot(x, wsk_ref[...], preferred_element_type=jnp.float32)
    res = jnp.maximum(res + bsk_ref[...], 0.0)                # (P, Cout_p) f32

    # conv1 (1x1) + BN + ReLU
    y1 = jnp.dot(x, w1_ref[...], preferred_element_type=jnp.float32)
    y1 = jnp.maximum(y1 + b1_ref[...], 0.0)                   # (P, Cp) f32

    # conv2 (3x3, stride 1, pad 1) + BN + ReLU
    # Zero-pad conv1 output spatially in VMEM, fold the 9 taps into K, 1 matmul.
    pad_ref[...] = jnp.zeros_like(pad_ref)
    pad_ref[1:h + 1, 1:w + 1, :] = y1.reshape(h, w, cp)
    taps = [pad_ref[ky:ky + h, kx:kx + w, :].reshape(p, cp).astype(jnp.bfloat16)
            for ky in range(3) for kx in range(3)]
    cat = jnp.concatenate(taps, axis=-1)                      # (P, 9*Cp) bf16
    y2 = jnp.dot(cat, w2_ref[...], preferred_element_type=jnp.float32)
    y2 = jnp.maximum(y2 + b2_ref[...], 0.0)                   # (P, Cp) f32

    # conv3 (1x1) + BN + ReLU, then the final residual add
    y3 = jnp.dot(y2.astype(jnp.bfloat16), w3_ref[...],
                 preferred_element_type=jnp.float32)
    y3 = jnp.maximum(y3 + b3_ref[...], 0.0) + res             # (P, Cout_p) f32

    o_ref[...] = y3.reshape(1, h, w, cout).astype(o_ref.dtype)


# ---------------------------------------------------------------------------
# Parameter folding (inference-mode BN -> weights/bias) + padding to 128 lanes.
# ---------------------------------------------------------------------------
def fold_bn(gamma, beta, mean, var, eps=1e-5):
    scale = gamma / jnp.sqrt(var + eps)
    bias = beta - mean * scale
    return scale.astype(jnp.float32), bias.astype(jnp.float32)


def _fold_1x1(w, bn, cin_p, cout_p):
    scale, bias = fold_bn(*bn)
    w_eff = w * scale[None, :]
    w_eff = jnp.pad(w_eff, ((0, cin_p - w.shape[0]), (0, cout_p - w.shape[1])))
    b_eff = jnp.pad(bias, (0, cout_p - bias.shape[0])).reshape(1, cout_p)
    return w_eff.astype(jnp.bfloat16), b_eff.astype(jnp.float32)


def _fold_3x3(w9, bn, c_p):
    c = w9.shape[1]
    scale, bias = fold_bn(*bn)
    w_eff = w9 * scale[None, None, :]
    w_eff = jnp.pad(w_eff, ((0, 0), (0, c_p - c), (0, c_p - c)))
    w_eff = w_eff.reshape(9 * c_p, c_p)                # rows [k*Cp:(k+1)*Cp] = tap k
    b_eff = jnp.pad(bias, (0, c_p - c)).reshape(1, c_p)
    return w_eff.astype(jnp.bfloat16), b_eff.astype(jnp.float32)


# ---------------------------------------------------------------------------
# Wrapper
# ---------------------------------------------------------------------------
@jax.jit
def bottleneck_forward(x_nchw, params):
    """Forward of BottleNeck with keyword=('origin','cbas'), base=1, stride=1."""
    n, cin, h, w = x_nchw.shape
    planes = params['w1'].shape[1]
    cout = params['w3'].shape[1]
    cin_p = _round_up(cin, 128)
    cp = _round_up(planes, 128)
    cout_p = _round_up(cout, 128)
    assert w % 8 == 0, "W must be a multiple of 8 (sublane-friendly reshape)"
    # TODO(synk): for very large feature maps add spatial (H) tiling with a
    # +1-row halo; per-image tiles are ample for ResNet-sized inputs and keep
    # the 3x3 halo handling trivial.

    x = jnp.transpose(x_nchw, (0, 2, 3, 1)).astype(jnp.float32)       # NCHW->NHWC
    x_p = jnp.pad(x, ((0, 0), (0, 0), (0, 0), (0, cin_p - cin))).astype(jnp.bfloat16)

    w1, b1 = _fold_1x1(params['w1'], params['bn1'], cin_p, cp)
    wsk, bsk = _fold_1x1(params['w_skip'], params['bn_s'], cin_p, cout_p)
    w3, b3 = _fold_1x1(params['w3'], params['bn3'], cp, cout_p)
    w2, b2 = _fold_3x3(params['w2'], params['bn2'], cp)

    p = h * w
    flops = 2 * n * p * (cin_p * cp + cin_p * cout_p + 9 * cp * cp + cp * cout_p)
    bytes_accessed = (n * p * cin_p * 2 + n * p * cout_p * 4
                      + (cin_p * cp + cin_p * cout_p + 9 * cp * cp + cp * cout_p) * 2
                      + 2 * (cp + cout_p) * 4)

    out_pad = pl.pallas_call(
        _bottleneck_kernel,
        out_shape=jax.ShapeDtypeStruct((n, h, w, cout_p), jnp.float32),
        grid_spec=pltpu.PrefetchScalarGridSpec(
            num_scalar_prefetch=0,
            grid=(n,),
            in_specs=[
                pl.BlockSpec((1, h, w, cin_p), lambda i: (i, 0, 0, 0)),   # x
                pl.BlockSpec((cin_p, cp), lambda i: (0, 0)),              # w1
                pl.BlockSpec((1, cp), lambda i: (0, 0)),                  # b1
                pl.BlockSpec((9 * cp, cp), lambda i: (0, 0)),             # w2
                pl.BlockSpec((1, cp), lambda i: (0, 0)),                  # b2
                pl.BlockSpec((cp, cout_p), lambda i: (0, 0)),             # w3
                pl.BlockSpec((1, cout_p), lambda i: (0, 0)),              # b3
                pl.BlockSpec((cin_p, cout_p), lambda i: (0, 0)),          # w_skip
                pl.BlockSpec((1, cout_p), lambda i: (0, 0)),              # b_skip
            ],
            out_specs=pl.BlockSpec((1, h, w, cout_p), lambda i: (i, 0, 0, 0)),
            scratch_shapes=[pltpu.VMEM((h + 2, w + 2, cp), jnp.float32)],
        ),
        compiler_params=pltpu.CompilerParams(
            dimension_semantics=("parallel",),
            vmem_limit_bytes=48 * 1024 * 1024,     # below v7x's 64 MiB physical
        ),
        cost_estimate=pl.CostEstimate(
            flops=flops, transcendentals=0, bytes_accessed=bytes_accessed),
    )(x_p, w1, b1, w2, b2, w3, b3, wsk, bsk)

    out = out_pad[..., :cout]                          # drop channel padding
    return jnp.transpose(out, (0, 3, 1, 2))            # NHWC -> NCHW


# ---------------------------------------------------------------------------
# Pure-JAX reference (same bf16-operand / f32-accumulate numerics).
# ---------------------------------------------------------------------------
def _reference(x_nchw, params):
    x = jnp.transpose(x_nchw, (0, 2, 3, 1)).astype(jnp.float32)
    relu = lambda z: jnp.maximum(z, 0.0)

    def bn(y, pbn):
        g, b, m, v = pbn
        return (y - m) / jnp.sqrt(v + 1e-5) * g + b

    def conv1x1(y, w):
        return jnp.einsum('nhwc,cd->nhwd', y.astype(jnp.bfloat16),
                          w.astype(jnp.bfloat16),
                          preferred_element_type=jnp.float32)

    def conv3x3(y, w9):
        w = w9.reshape(3, 3, w9.shape[1], w9.shape[2])   # HWIO
        return jax.lax.conv_general_dilated(
            y.astype(jnp.bfloat16), w.astype(jnp.bfloat16),
            window_strides=(1, 1), padding='SAME',
            dimension_numbers=('NHWC', 'HWIO', 'NHWC'),
            preferred_element_type=jnp.float32)

    residual = relu(bn(conv1x1(x, params['w_skip']), params['bn_s']))
    out = relu(bn(conv1x1(x, params['w1']), params['bn1']))
    out = relu(bn(conv3x3(out, params['w2']), params['bn2']))
    out = relu(bn(conv1x1(out, params['w3']), params['bn3'])) + residual
    return jnp.transpose(out, (0, 3, 1, 2))


# ---------------------------------------------------------------------------
if __name__ == "__main__":
    key = jax.random.PRNGKey(0)
    ks = jax.random.split(key, 10)

    N, inplanes, H, W = 2, 8, 16, 16
    planes = 4
    expansion = 4                      # BottleNeck.expansion
    outplanes = planes * expansion     # 16

    def bn_params(k, c):
        k1, k2, k3, k4 = jax.random.split(k, 4)
        gamma = jax.random.uniform(k1, (c,), jnp.float32, 0.5, 1.5)
        beta = jax.random.normal(k2, (c,), jnp.float32) * 0.1
        mean = jax.random.normal(k3, (c,), jnp.float32) * 0.1
        var = jax.random.uniform(k4, (c,), jnp.float32, 0.5, 1.5)
        return (gamma, beta, mean, var)

    params = {
        # conv weights stored as (Cin, Cout) [1x1] and (9, Cin, Cout) [3x3]
        'w_skip': jax.random.normal(ks[0], (inplanes, outplanes), jnp.float32) * 0.1,
        'w1': jax.random.normal(ks[1], (inplanes, planes), jnp.float32) * 0.1,
        'w2': jax.random.normal(ks[2], (9, planes, planes), jnp.float32) * 0.1,
        'w3': jax.random.normal(ks[3], (planes, outplanes), jnp.float32) * 0.1,
        'bn_s': bn_params(ks[4], outplanes),
        'bn1': bn_params(ks[5], planes),
        'bn2': bn_params(ks[6], planes),
        'bn3': bn_params(ks[7], outplanes),
    }

    x = jax.random.normal(ks[8], (N, inplanes, H, W), jnp.float32)  # NCHW input

    out = jax.block_until_ready(bottleneck_forward(x, params))
    ref = jax.block_until_ready(_reference(x, params))

    assert out.shape == (N, outplanes, H, W)
    assert jnp.allclose(out, ref, atol=2e-2, rtol=2e-2), \
        float(jnp.max(jnp.abs(out - ref)))
    # TODO(synk): other keyword branches (fixup/prone/DCHR/bacs, stride!=1
    # avg-pool skip, training-mode batch statistics, quantized qconv) are not
    # translated.
    print("KERNEL_OK")
</pallas_src>

<mosaic_0001>
module attributes {stable_mosaic.version = 11 : i64} {
  func.func @_bottleneck_kernel(%arg0: i32, %arg1: memref<1x16x16x128xbf16, #tpu.memory_space<vmem>>, %arg2: memref<128x128xbf16, #tpu.memory_space<vmem>>, %arg3: memref<1x128xf32, #tpu.memory_space<vmem>>, %arg4: memref<1152x128xbf16, #tpu.memory_space<vmem>>, %arg5: memref<1x128xf32, #tpu.memory_space<vmem>>, %arg6: memref<128x128xbf16, #tpu.memory_space<vmem>>, %arg7: memref<1x128xf32, #tpu.memory_space<vmem>>, %arg8: memref<128x128xbf16, #tpu.memory_space<vmem>>, %arg9: memref<1x128xf32, #tpu.memory_space<vmem>>, %arg10: memref<1x16x16x128xf32, #tpu.memory_space<vmem>>, %arg11: memref<18x18x128xf32, #tpu.memory_space<vmem>>) attributes {dimension_semantics = [#tpu.dimension_semantics<parallel>], iteration_bounds = array<i64: 2>, scalar_prefetch = 0 : i64, scratch_operands = 1 : i64, tpu.core_type = #tpu.core_type<tc>, window_params = [{transform_indices = @transform_0, window_bounds = array<i64: 1, 16, 16, 128>}, {pipeline_mode = #tpu.pipeline_mode<synchronous>, transform_indices = @transform_1, window_bounds = array<i64: 128, 128>}, {pipeline_mode = #tpu.pipeline_mode<synchronous>, transform_indices = @transform_2, window_bounds = array<i64: 1, 128>}, {pipeline_mode = #tpu.pipeline_mode<synchronous>, transform_indices = @transform_3, window_bounds = array<i64: 1152, 128>}, {pipeline_mode = #tpu.pipeline_mode<synchronous>, transform_indices = @transform_4, window_bounds = array<i64: 1, 128>}, {pipeline_mode = #tpu.pipeline_mode<synchronous>, transform_indices = @transform_5, window_bounds = array<i64: 128, 128>}, {pipeline_mode = #tpu.pipeline_mode<synchronous>, transform_indices = @transform_6, window_bounds = array<i64: 1, 128>}, {pipeline_mode = #tpu.pipeline_mode<synchronous>, transform_indices = @transform_7, window_bounds = array<i64: 128, 128>}, {pipeline_mode = #tpu.pipeline_mode<synchronous>, transform_indices = @transform_8, window_bounds = array<i64: 1, 128>}, {transform_indices = @transform_9, window_bounds = array<i64: 1, 16, 16, 128>}]} {
    %c0 = arith.constant 0 : index
    %c0_0 = arith.constant 0 : index
    %c0_1 = arith.constant 0 : index
    %c0_2 = arith.constant 0 : index
    %0 = vector.load %arg1[%c0, %c0_0, %c0_1, %c0_2] : memref<1x16x16x128xbf16, #tpu.memory_space<vmem>>, vector<1x16x16x128xbf16>
    %1 = vector.shape_cast %0 : vector<1x16x16x128xbf16> to vector<16x16x128xbf16>
    %2 = vector.shape_cast %1 : vector<16x16x128xbf16> to vector<256x128xbf16>
    %c0_3 = arith.constant 0 : index
    %c0_4 = arith.constant 0 : index
    %3 = vector.load %arg8[%c0_3, %c0_4] : memref<128x128xbf16, #tpu.memory_space<vmem>>, vector<128x128xbf16>
    %cst = arith.constant dense<0.000000e+00> : vector<256x128xf32>
    %4 = tpu.matmul %2, %3, %cst {dimension_numbers = #tpu.dot_dimension_numbers<[1], [0], [0], [1], [0, 0, 1, 1], [], []>} : vector<256x128xbf16>, vector<128x128xbf16>, vector<256x128xf32> -> vector<256x128xf32>
    %c0_5 = arith.constant 0 : index
    %c0_6 = arith.constant 0 : index
    %5 = vector.load %arg9[%c0_5, %c0_6] : memref<1x128xf32, #tpu.memory_space<vmem>>, vector<1x128xf32>
    %6 = vector.broadcast %5 : vector<1x128xf32> to vector<256x128xf32>
    %7 = arith.addf %4, %6 : vector<256x128xf32>
    %cst_7 = arith.constant 0.000000e+00 : f32
    %8 = vector.broadcast %cst_7 : f32 to vector<256x128xf32>
    %9 = arith.maximumf %7, %8 : vector<256x128xf32>
    %c0_8 = arith.constant 0 : index
    %c0_9 = arith.constant 0 : index
    %10 = vector.load %arg2[%c0_8, %c0_9] : memref<128x128xbf16, #tpu.memory_space<vmem>>, vector<128x128xbf16>
    %cst_10 = arith.constant dense<0.000000e+00> : vector<256x128xf32>
    %11 = tpu.matmul %2, %10, %cst_10 {dimension_numbers = #tpu.dot_dimension_numbers<[1], [0], [0], [1], [0, 0, 1, 1], [], []>} : vector<256x128xbf16>, vector<128x128xbf16>, vector<256x128xf32> -> vector<256x128xf32>
    %c0_11 = arith.constant 0 : index
    %c0_12 = arith.constant 0 : index
    %12 = vector.load %arg3[%c0_11, %c0_12] : memref<1x128xf32, #tpu.memory_space<vmem>>, vector<1x128xf32>
    %13 = vector.broadcast %12 : vector<1x128xf32> to vector<256x128xf32>
    %14 = arith.addf %11, %13 : vector<256x128xf32>
    %cst_13 = arith.constant 0.000000e+00 : f32
    %15 = vector.broadcast %cst_13 : f32 to vector<256x128xf32>
    %16 = arith.maximumf %14, %15 : vector<256x128xf32>
    %cst_14 = arith.constant 0.000000e+00 : f32
    %17 = vector.broadcast %cst_14 : f32 to vector<18x18x128xf32>
    %c0_15 = arith.constant 0 : index
    %c0_16 = arith.constant 0 : index
    %c0_17 = arith.constant 0 : index
    %18 = vector.load %arg11[%c0_15, %c0_16, %c0_17] : memref<18x18x128xf32, #tpu.memory_space<vmem>>, vector<18x18x128xf32>
    tpu.vector_store %arg11[%c0_15, %c0_16, %c0_17], %17 {strides = array<i32>} : memref<18x18x128xf32, #tpu.memory_space<vmem>>, vector<18x18x128xf32>,
    %19 = vector.shape_cast %16 : vector<256x128xf32> to vector<16x16x128xf32>
    %c1 = arith.constant 1 : index
    %c1_18 = arith.constant 1 : index
    %c0_19 = arith.constant 0 : index
    %20 = vector.load %arg11[%c1, %c1_18, %c0_19] : memref<18x18x128xf32, #tpu.memory_space<vmem>>, vector<16x16x128xf32>
    tpu.vector_store %arg11[%c1, %c1_18, %c0_19], %19 {strides = array<i32>} : memref<18x18x128xf32, #tpu.memory_space<vmem>>, vector<16x16x128xf32>,
    %c0_20 = arith.constant 0 : index
    %c0_21 = arith.constant 0 : index
    %c0_22 = arith.constant 0 : index
    %21 = vector.load %arg11[%c0_20, %c0_21, %c0_22] : memref<18x18x128xf32, #tpu.memory_space<vmem>>, vector<16x16x128xf32>
    %22 = vector.shape_cast %21 : vector<16x16x128xf32> to vector<256x128xf32>
    %23 = arith.truncf %22 : vector<256x128xf32> to vector<256x128xbf16>
    %c0_23 = arith.constant 0 : index
    %c1_24 = arith.constant 1 : index
    %c0_25 = arith.constant 0 : index
    %24 = vector.load %arg11[%c0_23, %c1_24, %c0_25] : memref<18x18x128xf32, #tpu.memory_space<vmem>>, vector<16x16x128xf32>
    %25 = vector.shape_cast %24 : vector<16x16x128xf32> to vector<256x128xf32>
    %26 = arith.truncf %25 : vector<256x128xf32> to vector<256x128xbf16>
    %c0_26 = arith.constant 0 : index
    %c2 = arith.constant 2 : index
    %c0_27 = arith.constant 0 : index
    %27 = vector.load %arg11[%c0_26, %c2, %c0_27] : memref<18x18x128xf32, #tpu.memory_space<vmem>>, vector<16x16x128xf32>
    %28 = vector.shape_cast %27 : vector<16x16x128xf32> to vector<256x128xf32>
    %29 = arith.truncf %28 : vector<256x128xf32> to vector<256x128xbf16>
    %c1_28 = arith.constant 1 : index
    %c0_29 = arith.constant 0 : index
    %c0_30 = arith.constant 0 : index
    %30 = vector.load %arg11[%c1_28, %c0_29, %c0_30] : memref<18x18x128xf32, #tpu.memory_space<vmem>>, vector<16x16x128xf32>
    %31 = vector.shape_cast %30 : vector<16x16x128xf32> to vector<256x128xf32>
    %32 = arith.truncf %31 : vector<256x128xf32> to vector<256x128xbf16>
    %c1_31 = arith.constant 1 : index
    %c1_32 = arith.constant 1 : index
    %c0_33 = arith.constant 0 : index
    %33 = vector.load %arg11[%c1_31, %c1_32, %c0_33] : memref<18x18x128xf32, #tpu.memory_space<vmem>>, vector<16x16x128xf32>
    %34 = vector.shape_cast %33 : vector<16x16x128xf32> to vector<256x128xf32>
    %35 = arith.truncf %34 : vector<256x128xf32> to vector<256x128xbf16>
    %c1_34 = arith.constant 1 : index
    %c2_35 = arith.constant 2 : index
    %c0_36 = arith.constant 0 : index
    %36 = vector.load %arg11[%c1_34, %c2_35, %c0_36] : memref<18x18x128xf32, #tpu.memory_space<vmem>>, vector<16x16x128xf32>
    %37 = vector.shape_cast %36 : vector<16x16x128xf32> to vector<256x128xf32>
    %38 = arith.truncf %37 : vector<256x128xf32> to vector<256x128xbf16>
    %c2_37 = arith.constant 2 : index
    %c0_38 = arith.constant 0 : index
    %c0_39 = arith.constant 0 : index
    %39 = vector.load %arg11[%c2_37, %c0_38, %c0_39] : memref<18x18x128xf32, #tpu.memory_space<vmem>>, vector<16x16x128xf32>
    %40 = vector.shape_cast %39 : vector<16x16x128xf32> to vector<256x128xf32>
    %41 = arith.truncf %40 : vector<256x128xf32> to vector<256x128xbf16>
    %c2_40 = arith.constant 2 : index
    %c1_41 = arith.constant 1 : index
    %c0_42 = arith.constant 0 : index
    %42 = vector.load %arg11[%c2_40, %c1_41, %c0_42] : memref<18x18x128xf32, #tpu.memory_space<vmem>>, vector<16x16x128xf32>
    %43 = vector.shape_cast %42 : vector<16x16x128xf32> to vector<256x128xf32>
    %44 = arith.truncf %43 : vector<256x128xf32> to vector<256x128xbf16>
    %c2_43 = arith.constant 2 : index
    %c2_44 = arith.constant 2 : index
    %c0_45 = arith.constant 0 : index
    %45 = vector.load %arg11[%c2_43, %c2_44, %c0_45] : memref<18x18x128xf32, #tpu.memory_space<vmem>>, vector<16x16x128xf32>
    %46 = vector.shape_cast %45 : vector<16x16x128xf32> to vector<256x128xf32>
    %47 = arith.truncf %46 : vector<256x128xf32> to vector<256x128xbf16>
    %48 = tpu.concatenate %23, %26, %29, %32, %35, %38, %41, %44, %47 in 1 : vector<256x128xbf16>, vector<256x128xbf16>, vector<256x128xbf16>, vector<256x128xbf16>, vector<256x128xbf16>, vector<256x128xbf16>, vector<256x128xbf16>, vector<256x128xbf16>, vector<256x128xbf16> -> vector<256x1152xbf16>
    %c0_46 = arith.constant 0 : index
    %c0_47 = arith.constant 0 : index
    %49 = vector.load %arg4[%c0_46, %c0_47] : memref<1152x128xbf16, #tpu.memory_space<vmem>>, vector<1152x128xbf16>
    %cst_48 = arith.constant dense<0.000000e+00> : vector<256x128xf32>
    %50 = tpu.matmul %48, %49, %cst_48 {dimension_numbers = #tpu.dot_dimension_numbers<[1], [0], [0], [1], [0, 0, 1, 1], [], []>} : vector<256x1152xbf16>, vector<1152x128xbf16>, vector<256x128xf32> -> vector<256x128xf32>
    %c0_49 = arith.constant 0 : index
    %c0_50 = arith.constant 0 : index
    %51 = vector.load %arg5[%c0_49, %c0_50] : memref<1x128xf32, #tpu.memory_space<vmem>>, vector<1x128xf32>
    %52 = vector.broadcast %51 : vector<1x128xf32> to vector<256x128xf32>
    %53 = arith.addf %50, %52 : vector<256x128xf32>
    %cst_51 = arith.constant 0.000000e+00 : f32
    %54 = vector.broadcast %cst_51 : f32 to vector<256x128xf32>
    %55 = arith.maximumf %53, %54 : vector<256x128xf32>
    %56 = arith.truncf %55 : vector<256x128xf32> to vector<256x128xbf16>
    %c0_52 = arith.constant 0 : index
    %c0_53 = arith.constant 0 : index
    %57 = vector.load %arg6[%c0_52, %c0_53] : memref<128x128xbf16, #tpu.memory_space<vmem>>, vector<128x128xbf16>
    %cst_54 = arith.constant dense<0.000000e+00> : vector<256x128xf32>
    %58 = tpu.matmul %56, %57, %cst_54 {dimension_numbers = #tpu.dot_dimension_numbers<[1], [0], [0], [1], [0, 0, 1, 1], [], []>} : vector<256x128xbf16>, vector<128x128xbf16>, vector<256x128xf32> -> vector<256x128xf32>
    %c0_55 = arith.constant 0 : index
    %c0_56 = arith.constant 0 : index
    %59 = vector.load %arg7[%c0_55, %c0_56] : memref<1x128xf32, #tpu.memory_space<vmem>>, vector<1x128xf32>
    %60 = vector.broadcast %59 : vector<1x128xf32> to vector<256x128xf32>
    %61 = arith.addf %58, %60 : vector<256x128xf32>
    %cst_57 = arith.constant 0.000000e+00 : f32
    %62 = vector.broadcast %cst_57 : f32 to vector<256x128xf32>
    %63 = arith.maximumf %61, %62 : vector<256x128xf32>
    %64 = arith.addf %63, %9 : vector<256x128xf32>
    %65 = vector.shape_cast %64 : vector<256x128xf32> to vector<1x16x16x128xf32>
    %c0_58 = arith.constant 0 : index
    %c0_59 = arith.constant 0 : index
    %c0_60 = arith.constant 0 : index
    %c0_61 = arith.constant 0 : index
    %66 = vector.load %arg10[%c0_58, %c0_59, %c0_60, %c0_61] : memref<1x16x16x128xf32, #tpu.memory_space<vmem>>, vector<1x16x16x128xf32>
    tpu.vector_store %arg10[%c0_58, %c0_59, %c0_60, %c0_61], %65 {strides = array<i32>} : memref<1x16x16x128xf32, #tpu.memory_space<vmem>>, vector<1x16x16x128xf32>,
    return
  }
  func.func @transform_0(%arg0: i32) -> (i32, i32, i32, i32) {
    %c0_i32 = arith.constant 0 : i32
    %c0_i32_0 = arith.constant 0 : i32
    %c0_i32_1 = arith.constant 0 : i32
    %c0_i32_2 = arith.constant 0 : i32
    return %arg0, %c0_i32, %c0_i32_0, %c0_i32_1 : i32, i32, i32, i32
  }
  func.func @transform_1(%arg0: i32) -> (i32, i32) {
    %c0_i32 = arith.constant 0 : i32
    %c0_i32_0 = arith.constant 0 : i32
    %c0_i32_1 = arith.constant 0 : i32
    return %c0_i32, %c0_i32_0 : i32, i32
  }
  func.func @transform_2(%arg0: i32) -> (i32, i32) {
    %c0_i32 = arith.constant 0 : i32
    %c0_i32_0 = arith.constant 0 : i32
    %c0_i32_1 = arith.constant 0 : i32
    return %c0_i32, %c0_i32_0 : i32, i32
  }
  func.func @transform_3(%arg0: i32) -> (i32, i32) {
    %c0_i32 = arith.constant 0 : i32
    %c0_i32_0 = arith.constant 0 : i32
    %c0_i32_1 = arith.constant 0 : i32
    return %c0_i32, %c0_i32_0 : i32, i32
  }
  func.func @transform_4(%arg0: i32) -> (i32, i32) {
    %c0_i32 = arith.constant 0 : i32
    %c0_i32_0 = arith.constant 0 : i32
    %c0_i32_1 = arith.constant 0 : i32
    return %c0_i32, %c0_i32_0 : i32, i32
  }
  func.func @transform_5(%arg0: i32) -> (i32, i32) {
    %c0_i32 = arith.constant 0 : i32
    %c0_i32_0 = arith.constant 0 : i32
    %c0_i32_1 = arith.constant 0 : i32
    return %c0_i32, %c0_i32_0 : i32, i32
  }
  func.func @transform_6(%arg0: i32) -> (i32, i32) {
    %c0_i32 = arith.constant 0 : i32
    %c0_i32_0 = arith.constant 0 : i32
    %c0_i32_1 = arith.constant 0 : i32
    return %c0_i32, %c0_i32_0 : i32, i32
  }
  func.func @transform_7(%arg0: i32) -> (i32, i32) {
    %c0_i32 = arith.constant 0 : i32
    %c0_i32_0 = arith.constant 0 : i32
    %c0_i32_1 = arith.constant 0 : i32
    return %c0_i32, %c0_i32_0 : i32, i32
  }
  func.func @transform_8(%arg0: i32) -> (i32, i32) {
    %c0_i32 = arith.constant 0 : i32
    %c0_i32_0 = arith.constant 0 : i32
    %c0_i32_1 = arith.constant 0 : i32
    return %c0_i32, %c0_i32_0 : i32, i32
  }
  func.func @transform_9(%arg0: i32) -> (i32, i32, i32, i32) {
    %c0_i32 = arith.constant 0 : i32
    %c0_i32_0 = arith.constant 0 : i32
    %c0_i32_1 = arith.constant 0 : i32
    %c0_i32_2 = arith.constant 0 : i32
    return %arg0, %c0_i32, %c0_i32_0, %c0_i32_1 : i32, i32, i32, i32
  }
}

</mosaic_0001>

<bundles_post_ra>
// kernel: bottleneck_forward.1
= control target key start
LH: loop header
LB: loop body
LE: loop exit
PB: predicated region body
PF: predicated region fallthrough
CT: control target
= control target key end

     0   :  { %s4376_s30 = smov 0   ;;  %s5390_s0 = inlined_call_operand.vmem [shape: bf16[2,16,16,128], index: 0, kind: input, shape index: {}]   ;;  %s5391_s1 = inlined_call_operand.vmem [shape: bf16[128,128], index: 1, kind: input, shape index: {}]   ;;  %s5392_s2 = inlined_call_operand.vmem [shape: f32[1,128], index: 2, kind: input, shape index: {}]   ;;  %s5393_s3 = inlined_call_operand.vmem [shape: bf16[1152,128], index: 3, kind: input, shape index: {}]   ;;  %s5394_s4 = inlined_call_operand.vmem [shape: f32[1,128], index: 4, kind: input, shape index: {}]   ;;  %s5395_s5 = inlined_call_operand.vmem [shape: bf16[128,128], index: 5, kind: input, shape index: {}]   ;;  %s5396_s6 = inlined_call_operand.vmem [shape: f32[1,128], index: 6, kind: input, shape index: {}]   ;;  %s5397_s7 = inlined_call_operand.vmem [shape: bf16[128,128], index: 7, kind: input, shape index: {}]   ;;  %s5398_s8 = inlined_call_operand.vmem [shape: f32[1,128], index: 8, kind: input, shape index: {}]   ;;  %s5399_s9 = inlined_call_operand.vmem [shape: f32[2,16,16,128], index: 9, kind: output, shape index: {}]  }
   0x1 LB: > { %s3329_s10 = sadd.s32 4294967295, %s4322_s30   ;;  %p3333_p0 = scmp.ge.s32.totalorder %s4322_s30, 1  ;;  %s4322_s30 = sphi %s4376_s30, %s19_s30  }
   0x2   : > { %p287_p1 = scmp.lt.s32.totalorder %s4322_s30, 3 }
   0x4   : > { %p288_p2 = pnand %p3333_p0, %p287_p1 }
   0x6   : > { %291 = sbr.rel (%p288_p2) target bundleno = 1023 (0x3ff), region = 56 }
   0xd   : > { %v4203_v0 = vld [vmem:[%s5391_s1] sm:$0xff]   ;;  %p323_p3 = scmp.lt.s32.totalorder %s3329_s10, 1  ;;  %v4204_v1 = vld [vmem:[%s5391_s1 + $0x8] sm:$0xff]   ;;  %v4205_v2 = vld [vmem:[%s5391_s1 + $0x10] sm:$0xff]   ;;  %v4324_v53 = vmov 0.0  }
   0xe   : > { %4050 = vmatprep.subr.bf16.mxu1 %v4203_v0  ;;  %v4206_v3 = vld [vmem:[%s5391_s1 + $0x18] sm:$0xff]   ;;  %v4207_v5 = vld [vmem:[%s5391_s1 + $0x20] sm:$0xff]   ;;  %v4208_v6 = vld [vmem:[%s5391_s1 + $0x28] sm:$0xff]   ;;  %996 = vst [vmem:[#allocation2 + $0x30] sm:$0xff] %v4324_v53 }
   0xf   : > { %s5445_s10 = smov (!%p323_p3, %s3329_s10), 1  ;;  %4051 = vmatpush3.bf16.msra.mxu1 %v4203_v0  ;;  %v4209_v7 = vld [vmem:[%s5391_s1 + $0x30] sm:$0xff]   ;;  %v4210_v8 = vld [vmem:[%s5391_s1 + $0x38] sm:$0xff]   ;;  %v4227_v9 = vld [vmem:[%s5397_s7] sm:$0xff]   ;;  %997 = vst [vmem:[#allocation2 + $0x38] sm:$0xff] %v4324_v53  ;;  %v4325_v0 = vmov 0.0|0.0  }
  0x10   : > { %4052 = vmatprep.subr.bf16.mxu1 %v4204_v1  ;;  %s3456_s17 = sshll.u32 %s5445_s10, 7  ;;  %v4228_v10 = vld [vmem:[%s5397_s7 + $0x8] sm:$0xff]   ;;  %4002 = vmatprep.subr.bf16.mxu0 %v4227_v9  ;;  %v4229_v11 = vld [vmem:[%s5397_s7 + $0x10] sm:$0xff]   ;;  %v4230_v14 = vld [vmem:[%s5397_s7 + $0x18] sm:$0xff]   ;;  %990 = vst [vmem:[#allocation2] sm:$0xff] %v4324_v53  ;;  %s3457_s28 = sshll.u32 %s5445_s10, 8 }
  0x11   : > { %s4399_s20 = scalar_lea.vmem %s5390_s0, %s3456_s17  ;;  %4003 = vmatpush3.bf16.msra.mxu0 %v4227_v9  ;;  %v4231_v15 = vld [vmem:[%s5397_s7 + $0x20] sm:$0xff]   ;;  %v4232_v18 = vld [vmem:[%s5397_s7 + $0x28] sm:$0xff]   ;;  %v4233_v19 = vld [vmem:[%s5397_s7 + $0x30] sm:$0xff]   ;;  %991 = vst [vmem:[#allocation2 + $0x8] sm:$0xff] %v4324_v53  ;;  %s5268_s12 = scalar_lea.vmem %s5399_s9, %s3457_s28 }
  0x12   : > { %v4211_v4 = vld [vmem:[%s4399_s20] sm:$0xff]   ;;  %4004 = vmatprep.subr.bf16.mxu0 %v4228_v10  ;;  %v4212_v12 = vld [vmem:[%s4399_s20 + $0x8] sm:$0xff]   ;;  %v4213_v13 = vld [vmem:[%s4399_s20 + $0x10] sm:$0xff]   ;;  %992 = vst [vmem:[#allocation2 + $0x10] sm:$0x3] %v4324_v53 }
  0x13   : > { %4053 = vmatpush3.bf16.msra.mxu1 %v4204_v1  ;;  %4066 = vmatprep.mubr.bf16.mxu1 %v4211_v4  ;;  %v4214_v16 = vld [vmem:[%s4399_s20 + $0x18] sm:$0xff]   ;;  %v4215_v17 = vld [vmem:[%s4399_s20 + $0x20] sm:$0xff]   ;;  %v4216_v20 = vld [vmem:[%s4399_s20 + $0x28] sm:$0xff]   ;;  %993 = vst [vmem:[#allocation2 + $0x18] sm:$0xff] %v4324_v53 }
  0x14   : > { %4054 = vmatprep.subr.bf16.mxu1 %v4205_v2  ;;  %4018 = vmatprep.mubr.bf16.mxu0 %v4211_v4  ;;  %v4247_v21 = vld [vmem:[%s5393_s3 + $0xc0] sm:$0xff]   ;;  %v4217_v22 = vld [vmem:[%s4399_s20 + $0x30] sm:$0xff]   ;;  %v4249_v24 = vld [vmem:[%s5393_s3 + $0xc8] sm:$0xff]   ;;  %994 = vst [vmem:[#allocation2 + $0x20] sm:$0xff] %v4324_v53 }
  0x15   : > { %4005 = vmatpush3.bf16.msra.mxu0 %v4228_v10  ;;  %v4248_v23 = vld [vmem:[%s5393_s3 + $0x80] sm:$0xff]   ;;  %v4234_v25 = vld [vmem:[%s5397_s7 + $0x38] sm:$0xff]   ;;  %v4250_v26 = vld [vmem:[%s5393_s3 + $0x88] sm:$0xff]   ;;  %995 = vst [vmem:[#allocation2 + $0x28] sm:$0x3] %v4324_v53 }
  0x16   : > { %4006 = vmatprep.subr.bf16.mxu0 %v4229_v11  ;;  %v4235_v27 = vld [vmem:[%s5393_s3 + $0x40] sm:$0xff]   ;;  %v4253_v28 = vld [vmem:[%s5393_s3 + $0xd0] sm:$0xff]   ;;  %v4218_v30 = vld [vmem:[%s4399_s20 + $0x38] sm:$0xff]   ;;  %998 = vst [vmem:[#allocation2 + $0x40] sm:$0x3] %v4324_v53 }
  0x17   : > { %4055 = vmatpush3.bf16.msra.mxu1 %v4205_v2  ;;  %v4254_v29 = vld [vmem:[%s5393_s3 + $0x90] sm:$0xff]   ;;  %v4255_v31 = vld [vmem:[%s5393_s3 + $0xd8] sm:$0xff]   ;;  %v4219_v32 = vld [vmem:[%s4399_s20 + $0x40] sm:$0xff]   ;;  %999 = vst [vmem:[#allocation2 + $0x48] sm:$0xff] %v4324_v53 }
  0x18   : > { %4056 = vmatprep.subr.bf16.mxu1 %v4206_v3  ;;  %v4236_v33 = vld [vmem:[%s5393_s3] sm:$0xff]   ;;  %v4237_v34 = vld [vmem:[%s5393_s3 + $0x48] sm:$0xff]   ;;  %v4239_v36 = vld [vmem:[%s5393_s3 + $0x50] sm:$0xff]   ;;  %1000 = vst [vmem:[#allocation2 + $0x50] sm:$0xff] %v4324_v53 }
  0x19   : > { %4007 = vmatpush3.bf16.msra.mxu0 %v4229_v11  ;;  %v4238_v35 = vld [vmem:[%s5393_s3 + $0x8] sm:$0xff]   ;;  %v4221_v38 = vld [vmem:[%s4399_s20 + $0x50] sm:$0xff]   ;;  %v4241_v40 = vld [vmem:[%s5393_s3 + $0x58] sm:$0xff]   ;;  %1001 = vst [vmem:[#allocation2 + $0x58] sm:$0x3] %v4324_v53 }
  0x1a   : > { %4008 = vmatprep.subr.bf16.mxu0 %v4230_v14  ;;  %v4220_v37 = vld [vmem:[%s4399_s20 + $0x48] sm:$0xff]   ;;  %v4240_v39 = vld [vmem:[%s5393_s3 + $0x10] sm:$0xff]   ;;  %v4242_v41 = vld [vmem:[%s5393_s3 + $0x18] sm:$0xff]   ;;  %1002 = vst [vmem:[#allocation2 + $0x60] sm:$0xff] %v4324_v53 }
  0x1b   : > { %4057 = vmatpush3.bf16.msra.mxu1 %v4206_v3  ;;  %v4243_v42 = vld [vmem:[%s5393_s3 + $0x60] sm:$0xff]   ;;  %v4222_v43 = vld [vmem:[%s4399_s20 + $0x58] sm:$0xff]   ;;  %v4245_v46 = vld [vmem:[%s5393_s3 + $0x68] sm:$0xff]   ;;  %1003 = vst [vmem:[#allocation2 + $0x68] sm:$0xff] %v4324_v53 }
  0x1c   : > { %4058 = vmatprep.subr.bf16.mxu1 %v4207_v5  ;;  %v4223_v44 = vld [vmem:[%s4399_s20 + $0x60] sm:$0xff]   ;;  %v4246_v47 = vld [vmem:[%s5393_s3 + $0x28] sm:$0xff]   ;;  %v4251_v48 = vld [vmem:[%s5393_s3 + $0x70] sm:$0xff]   ;;  %1004 = vst [vmem:[#allocation2 + $0x70] sm:$0x3] %v4324_v53 }
  0x1d   : > { %4009 = vmatpush3.bf16.msra.mxu0 %v4230_v14  ;;  %v4244_v45 = vld [vmem:[%s5393_s3 + $0x20] sm:$0xff]   ;;  %v4224_v49 = vld [vmem:[%s4399_s20 + $0x68] sm:$0xff]   ;;  %v4225_v50 = vld [vmem:[%s4399_s20 + $0x70] sm:$0xff]   ;;  %1005 = vst [vmem:[#allocation2 + $0x78] sm:$0xff] %v4324_v53 }
  0x1e   : > { %4010 = vmatprep.subr.bf16.mxu0 %v4231_v15  ;;  %v4252_v51 = vld [vmem:[%s5393_s3 + $0x30] sm:$0xff]   ;;  %v4519_v52 = vld [vmem:[%s4399_s20 + $0x78] sm:$0xff]   ;;  %1006 = vst [vmem:[#allocation2 + $0x80] sm:$0xff] %v4324_v53  ;;  %1007 = vst [vmem:[#allocation2 + $0x88] sm:$0x3] %v4324_v53 }
  0x1f   : > { %4059 = vmatpush3.bf16.msra.mxu1 %v4207_v5  ;;  %1008 = vst [vmem:[#allocation2 + $0x90] sm:$0xff] %v4324_v53  ;;  %1009 = vst [vmem:[#allocation2 + $0x98] sm:$0xff] %v4324_v53  ;;  %v4256_v54 = vld [vmem:[%s5393_s3 + $0x98] sm:$0xff]   ;;  %v4259_v56 = vld [vmem:[%s5393_s3 + $0xe0] sm:$0xff]  }
  0x20   : > { %4060 = vmatprep.subr.bf16.mxu1 %v4208_v6  ;;  %1010 = vst [vmem:[#allocation2 + $0xa0] sm:$0x3] %v4324_v53  ;;  %1011 = vst [vmem:[#allocation2 + $0xa8] sm:$0xff] %v4324_v53  ;;  %v4257_v55 = vld [vmem:[%s5393_s3 + $0x78] sm:$0xff]   ;;  %v4260_v58 = vld [vmem:[%s5393_s3 + $0xa0] sm:$0xff]  }
  0x21   : > { %4011 = vmatpush3.bf16.msra.mxu0 %v4231_v15  ;;  %1012 = vst [vmem:[#allocation2 + $0xb0] sm:$0xff] %v4324_v53  ;;  %1013 = vst [vmem:[#allocation2 + $0xb8] sm:$0x3] %v4324_v53  ;;  %v4258_v57 = vld [vmem:[%s5393_s3 + $0x38] sm:$0xff]   ;;  %v1125_v59 = vld [vmem:[#allocation2 + $0x1] sm:$0xff] }
  0x22   : > { %4012 = vmatprep.subr.bf16.mxu0 %v4232_v18  ;;  %1014 = vst [vmem:[#allocation2 + $0xc0] sm:$0xff] %v4324_v53  ;;  %1015 = vst [vmem:[#allocation2 + $0xc8] sm:$0xff] %v4324_v53  ;;  %v1126_v60 = vld [vmem:[#allocation2 + $0x9] sm:$0xff]  ;;  %v4263_v1 = vld [vmem:[%s5393_s3 + $0x140] sm:$0xff]  }
  0x23   : > { %4061 = vmatpush3.bf16.msra.mxu1 %v4208_v6  ;;  %1016 = vst [vmem:[#allocation2 + $0xd0] sm:$0x3] %v4324_v53  ;;  %1017 = vst [vmem:[#allocation2 + $0xd8] sm:$0xff] %v4324_v53  ;;  %v1157_v61 = vpack.c.bf16 %v1126_v60, %v1125_v59  ;;  %v4261_v62 = vld [vmem:[%s5393_s3 + $0xe8] sm:$0xff]   ;;  %v4264_v2 = vld [vmem:[%s5393_s3 + $0xf0] sm:$0xff]  }
  0x24   : > { %4062 = vmatprep.subr.bf16.mxu1 %v4209_v7  ;;  %1018 = vst [vmem:[#allocation2 + $0xe0] sm:$0xff] %v4324_v53  ;;  %1019 = vst [vmem:[#allocation2 + $0xe8] sm:$0x3] %v4324_v53  ;;  %v4262_v63 = vld [vmem:[%s5393_s3 + $0xa8] sm:$0xff]   ;;  %v4265_v3 = vld [vmem:[%s5393_s3 + $0x100] sm:$0xff]  }
  0x25   : > { %4013 = vmatpush3.bf16.msra.mxu0 %v4232_v18  ;;  %1020 = vst [vmem:[#allocation2 + $0xf0] sm:$0xff] %v4324_v53  ;;  %1021 = vst [vmem:[#allocation2 + $0xf8] sm:$0xff] %v4324_v53  ;;  %v4266_v4 = vld [vmem:[%s5393_s3 + $0xb0] sm:$0xff]   ;;  %v4267_v5 = vld [vmem:[%s5393_s3 + $0xf8] sm:$0xff]  }
  0x26   : > { %4014 = vmatprep.subr.bf16.mxu0 %v4233_v19  ;;  %1022 = vst [vmem:[#allocation2 + $0x100] sm:$0x3] %v4324_v53  ;;  %1023 = vst [vmem:[#allocation2 + $0x108] sm:$0xff] %v4324_v53  ;;  %v4268_v6 = vld [vmem:[%s5393_s3 + $0xb8] sm:$0xff]   ;;  %v4271_v9 = vld [vmem:[%s5393_s3 + $0x150] sm:$0xff]  }
  0x27   : > { %4063 = vmatpush3.bf16.msra.mxu1 %v4209_v7  ;;  %1024 = vst [vmem:[#allocation2 + $0x110] sm:$0xff] %v4324_v53  ;;  %1025 = vst [vmem:[#allocation2 + $0x118] sm:$0x3] %v4324_v53  ;;  %v4269_v7 = vld [vmem:[%s5393_s3 + $0x148] sm:$0xff]   ;;  %v4272_v10 = vld [vmem:[%s5393_s3 + $0x110] sm:$0xff]  }
  0x28   : > { %4064 = vmatprep.subr.bf16.mxu1 %v4210_v8  ;;  %1026 = vst [vmem:[#allocation2 + $0x120] sm:$0xff] %v4324_v53  ;;  %1027 = vst [vmem:[#allocation2 + $0x128] sm:$0xff] %v4324_v53  ;;  %v4273_v11 = vld [vmem:[%s5393_s3 + $0x158] sm:$0xff]   ;;  %v4277_v14 = vld [vmem:[%s5393_s3 + $0x160] sm:$0xff]  }
  0x29   : > { %4015 = vmatpush3.bf16.msra.mxu0 %v4233_v19  ;;  %1028 = vst [vmem:[#allocation2 + $0x130] sm:$0x3] %v4324_v53  ;;  %1029 = vst [vmem:[#allocation2 + $0x138] sm:$0xff] %v4324_v53  ;;  %v4278_v15 = vld [vmem:[%s5393_s3 + $0x120] sm:$0xff]   ;;  %v4285_v18 = vld [vmem:[%s5393_s3 + $0x170] sm:$0xff]  }
  0x2a   : > { %4016 = vmatprep.subr.bf16.mxu0 %v4234_v25  ;;  %1030 = vst [vmem:[#allocation2 + $0x140] sm:$0xff] %v4324_v53  ;;  %1031 = vst [vmem:[#allocation2 + $0x148] sm:$0x3] %v4324_v53  ;;  %v4286_v19 = vld [vmem:[%s5393_s3 + $0x130] sm:$0xff]   ;;  %v4276_v60 = vld [vmem:[%s5393_s3 + $0x180] sm:$0xff]  }
  0x2b   : > { %4065 = vmatpush3.bf16.msra.mxu1 %v4210_v8  ;;  %1032 = vst [vmem:[#allocation2 + $0x150] sm:$0xff] %v4324_v53  ;;  %1033 = vst [vmem:[#allocation2 + $0x158] sm:$0xff] %v4324_v53  ;;  %v4270_v8 = vld [vmem:[%s5393_s3 + $0x108] sm:$0xff]  }
  0x2c   : > { %3618 = vmatprep.subr.bf16.mxu1 %v4247_v21  ;;  %1034 = vst [vmem:[#allocation2 + $0x160] sm:$0x3] %v4324_v53  ;;  %1035 = vst [vmem:[#allocation2 + $0x168] sm:$0xff] %v4324_v53  ;;  %v4290_v21 = vld [vmem:[%s5393_s3 + $0x138] sm:$0xff]  }
  0x2d   : > { %4017 = vmatpush3.bf16.msra.mxu0 %v4234_v25  ;;  %1036 = vst [vmem:[#allocation2 + $0x170] sm:$0xff] %v4324_v53  ;;  %1037 = vst [vmem:[#allocation2 + $0x178] sm:$0x3] %v4324_v53 }
  0x2e   : > { %4067 = vmatmul.mubr.bf16.vlgmr.msra.gmra.mrb[0].mxu1 %v4212_v12  ;;  %3506 = vmatprep.subr.bf16.mxu0 %v4235_v27  ;;  %1038 = vst [vmem:[#allocation2 + $0x180] sm:$0xff] %v4324_v53  ;;  %1039 = vst [vmem:[#allocation2 + $0x188] sm:$0xff] %v4324_v53 }
  0x2f   : > { %4070 = vmatprep.mubr.bf16.mxu1 %v4213_v13  ;;  %3619 = vmatpush3.bf16.msra.mxu1 %v4248_v23  ;;  %1040 = vst [vmem:[#allocation2 + $0x190] sm:$0x3] %v4324_v53  ;;  %1041 = vst [vmem:[#allocation2 + $0x198] sm:$0xff] %v4324_v53 }
  0x30   : > { %3620 = vmatprep.subr.bf16.mxu1 %v4249_v24  ;;  %4019 = vmatmul.mubr.bf16.vlgmr.msra.gmra.mrb[0].mxu0 %v4212_v12  ;;  %1042 = vst [vmem:[#allocation2 + $0x1a0] sm:$0xff] %v4324_v53  ;;  %1043 = vst [vmem:[#allocation2 + $0x1a8] sm:$0x3] %v4324_v53  ;;  %v4274_v12 = vld [vmem:[%s5393_s3 + $0x118] sm:$0xff]  }
  0x31   : > { %3507 = vmatpush3.bf16.msra.mxu0 %v4236_v33  ;;  %4022 = vmatprep.mubr.bf16.mxu0 %v4213_v13  ;;  %v4275_v13 = vld [vmem:[%s5393_s3 + $0x1c0] sm:$0xff]  }
  0x32   : > { %3508 = vmatprep.subr.bf16.mxu0 %v4237_v34  ;;  %v4619_v33 = vld [vmem:[%s5393_s3 + $0x200] sm:$0xff]  }
  0x33   : > { %3621 = vmatpush3.bf16.msra.mxu1 %v4250_v26 }
  0x34   : > { %3622 = vmatprep.subr.bf16.mxu1 %v4253_v28 }
  0x35   : > { %3509 = vmatpush3.bf16.msra.mxu0 %v4238_v35 }
  0x36   : > { %4071 = vmatmul.mubr.bf16.gmra.mrb[4].mxu1 %v4214_v16  ;;  %3510 = vmatprep.subr.bf16.mxu0 %v4239_v36 }
  0x37   : > { %4074 = vmatprep.mubr.bf16.mxu1 %v4215_v17  ;;  %3623 = vmatpush3.bf16.msra.mxu1 %v4254_v29 }
  0x38   : > { %3624 = vmatprep.subr.bf16.mxu1 %v4255_v31  ;;  %4023 = vmatmul.mubr.bf16.gmra.mrb[4].mxu0 %v4214_v16  ;;  %v4281_v16 = vld [vmem:[%s5393_s3 + $0x168] sm:$0xff]  }
  0x39   : > { %4026 = vmatprep.mubr.bf16.mxu0 %v4215_v17  ;;  %3511 = vmatpush3.bf16.msra.mxu0 %v4240_v39  ;;  %v4282_v17 = vld [vmem:[%s5393_s3 + $0x128] sm:$0xff]  }
  0x3a   : > { %3512 = vmatprep.subr.bf16.mxu0 %v4241_v40 }
  0x3b   : > { %3625 = vmatpush3.bf16.msra.mxu1 %v4256_v54 }
  0x3c   : > { %3626 = vmatprep.subr.bf16.mxu1 %v4259_v56 }
  0x3d   : > { %3513 = vmatpush3.bf16.msra.mxu0 %v4242_v41 }
  0x3e   : > { %4075 = vmatmul.mubr.bf16.gmra.mrb[8].mxu1 %v4216_v20  ;;  %3514 = vmatprep.subr.bf16.mxu0 %v4243_v42 }
  0x3f   : > { %4078 = vmatprep.mubr.bf16.mxu1 %v4217_v22  ;;  %3627 = vmatpush3.bf16.msra.mxu1 %v4260_v58 }
  0x40   : > { %4027 = vmatmul.mubr.bf16.gmra.mrb[8].mxu0 %v4216_v20  ;;  %3628 = vmatprep.subr.bf16.mxu1 %v4261_v62  ;;  %v4289_v20 = vld [vmem:[%s5393_s3 + $0x178] sm:$0xff]  }
  0x41   : > { %4030 = vmatprep.mubr.bf16.mxu0 %v4217_v22  ;;  %3515 = vmatpush3.bf16.msra.mxu0 %v4244_v45  ;;  %v4610_v22 = vld [vmem:[%s5392_s2] ss:$0 sm:$0xff] }
  0x42   : > { %3516 = vmatprep.subr.bf16.mxu0 %v4245_v46 }
  0x43   : > { %3629 = vmatpush3.bf16.msra.mxu1 %v4262_v63 }
  0x44   : > { %3630 = vmatprep.subr.bf16.mxu1 %v4264_v2 }
  0x45   : > { %3517 = vmatpush3.bf16.msra.mxu0 %v4246_v47 }
  0x46   : > { %4079 = vmatmul.mubr.bf16.gmra.mrb[12].mxu1 %v4218_v30  ;;  %3518 = vmatprep.subr.bf16.mxu0 %v4251_v48  ;;  %v1173_v48 = vld [vmem:[#allocation2 + $0x2] sm:$0xff] }
  0x47   : > { %4082 = vmatprep.mubr.bf16.mxu1 %v4219_v32  ;;  %3631 = vmatpush3.bf16.msra.mxu1 %v4266_v4 }
  0x48   : > { %4031 = vmatmul.mubr.bf16.gmra.mrb[12].mxu0 %v4218_v30  ;;  %3632 = vmatprep.subr.bf16.mxu1 %v4267_v5 }
  0x49   : > { %4034 = vmatprep.mubr.bf16.mxu0 %v4219_v32  ;;  %3519 = vmatpush3.bf16.msra.mxu0 %v4252_v51 }
  0x4a   : > { %3520 = vmatprep.subr.bf16.mxu0 %v4257_v55 }
  0x4b   : > { %3633 = vmatpush3.bf16.msra.mxu1 %v4268_v6 }
  0x4c   : > { %3842 = vmatprep.subr.bf16.mxu1 %v4275_v13 }
  0x4d   : > { %3521 = vmatpush3.bf16.msra.mxu0 %v4258_v57 }
  0x4e   : > { %4083 = vmatmul.mubr.bf16.gmra.mrb[16].mxu1 %v4220_v37  ;;  %3730 = vmatprep.subr.bf16.mxu0 %v4263_v1 }
  0x4f   : > { %4086 = vmatprep.mubr.bf16.mxu1 %v4221_v38 }
  0x50   : > { %4035 = vmatmul.mubr.bf16.gmra.mrb[16].mxu0 %v4220_v37 }
  0x51   : > { %4038 = vmatprep.mubr.bf16.mxu0 %v4221_v38 }
  0x56   : > { %4087 = vmatmul.mubr.bf16.gmra.mrb[20].mxu1 %v4222_v43 }
  0x57   : > { %4090 = vmatprep.mubr.bf16.mxu1 %v4223_v44 }
  0x58   : > { %4039 = vmatmul.mubr.bf16.gmra.mrb[20].mxu0 %v4222_v43 }
  0x59   : > { %4042 = vmatprep.mubr.bf16.mxu0 %v4223_v44 }
  0x5e   : > { %4091 = vmatmul.mubr.bf16.gmra.mrb[24].mxu1 %v4224_v49 }
  0x5f   : > { %4094 = vmatprep.mubr.bf16.mxu1 %v4225_v50 }
  0x60   : > { %4043 = vmatmul.mubr.bf16.gmra.mrb[24].mxu0 %v4224_v49  ;;  %v1174_v49 = vld [vmem:[#allocation2 + $0xa] sm:$0xff] }
  0x61   : > { %4046 = vmatprep.mubr.bf16.mxu0 %v4225_v50  ;;  %v1205_v54 = vpack.c.bf16 %v1174_v49, %v1173_v48 }
  0x66   : > { %4095 = vmatmul.mubr.bf16.gmra.mrb[28].mxu1 %v4519_v52 }
  0x68   : > { %4047 = vmatmul.mubr.bf16.gmra.mrb[28].mxu0 %v4519_v52 }
  0x69   : > { %2125 = vmatprep.mubr.bf16.mxu0 %v1157_v61 }
  0x70   : > { %2126 = vmatmul.mubr.bf16.vlgmr.msra.gmra.mrb[32].mxu0 %v4325_v0  ;;  %v4279_v0 = vld [vmem:[%s5393_s3 + $0x1c8] sm:$0xff]  }
  0x71   : > { %3731 = vmatpush3.bf16.msra.mxu0 %v4265_v3 }
  0x72   : > { %3732 = vmatprep.subr.bf16.mxu0 %v4269_v7 }
  0x75   : > { %3733 = vmatpush3.bf16.msra.mxu0 %v4270_v8 }
  0x76   : > { %3734 = vmatprep.subr.bf16.mxu0 %v4271_v9  ;;  %v4280_v9 = vld [vmem:[%s5393_s3 + $0x188] sm:$0xff]  }
  0x79   : > { %3735 = vmatpush3.bf16.msra.mxu0 %v4272_v10 }
  0x7a   : > { %3736 = vmatprep.subr.bf16.mxu0 %v4273_v11 }
  0x7d   : > { %3737 = vmatpush3.bf16.msra.mxu0 %v4274_v12  ;;  %v4283_v12 = vld [vmem:[%s5393_s3 + $0x1d0] sm:$0xff]  }
  0x7e   : > { %3738 = vmatprep.subr.bf16.mxu0 %v4277_v14 }
  0x81   : > { %3739 = vmatpush3.bf16.msra.mxu0 %v4278_v15 }
  0x82   : > { %3740 = vmatprep.subr.bf16.mxu0 %v4281_v16 }
  0x85   : > { %3741 = vmatpush3.bf16.msra.mxu0 %v4282_v17 }
  0x86   : > { %3742 = vmatprep.subr.bf16.mxu0 %v4285_v18 }
  0x89   : > { %3743 = vmatpush3.bf16.msra.mxu0 %v4286_v19 }
  0x8a   : > { %3744 = vmatprep.subr.bf16.mxu0 %v4289_v20 }
  0x8d   : > { %3745 = vmatpush3.bf16.msra.mxu0 %v4290_v21  ;;  %v4284_v21 = vld [vmem:[%s5393_s3 + $0x190] sm:$0xff]  }
  0x8e   : > { %4098 = vmatprep.subr.bf16.mxu0 %v4619_v33 }
 0x101   : > { %v4068_v23 = vpop.f32.mrb[0].mxu1 }
 0x102   : > { %v840_v24 = vadd.f32 %v4068_v23, %v4610_v22  ;;  %v831_v25 = vpop.f32.mrb[1].mxu1 }
 0x103   : > { %v832_v26 = vadd.f32 %v4610_v22, %v831_v25  ;;  %v4069_v27 = vpop.f32.mrb[2].mxu1  ;;  %v4664_v23 = vpop.f32.mrb[0].mxu0 }
 0x104   : > { %v960_v28 = vmax.f32 %v840_v24, 0.0  ;;  %v843_v29 = vadd.f32 %v4069_v27, %v4610_v22  ;;  %v834_v30 = vpop.f32.mrb[3].mxu1  ;;  %v4287_v27 = vld [vmem:[%s5393_s3 + $0x1d8] sm:$0xff]  }
 0x105   : > { %v958_v31 = vmax.f32 %v832_v26, 0.0  ;;  %v835_v32 = vadd.f32 %v4610_v22, %v834_v30 }
 0x106   : > { %1047 = vst [vmem:[#allocation2 + $0x31] sm:$0xff] %v960_v28  ;;  %v961_v34 = vmax.f32 %v843_v29, 0.0 }
 0x107   : > { %1045 = vst [vmem:[#allocation2 + $0x19] sm:$0xff] %v958_v31  ;;  %v959_v35 = vmax.f32 %v835_v32, 0.0 }
 0x108   : > { %1048 = vst [vmem:[#allocation2 + $0x39] sm:$0xff] %v961_v34  ;;  %v1159_v36 = vpack.c.bf16 %v961_v34, %v960_v28  ;;  %v4676_v34 = vpop.f32.mrb[1].mxu0 }
 0x109   : > { %1046 = vst [vmem:[#allocation2 + $0x21] sm:$0xff] %v959_v35  ;;  %v4072_v37 = vpop.f32.mrb[4].mxu1  ;;  %v1158_v38 = vpack.c.bf16 %v959_v35, %v958_v31 }
 0x10a   : > { %v856_v39 = vadd.f32 %v4072_v37, %v4610_v22  ;;  %v847_v40 = vpop.f32.mrb[5].mxu1  ;;  %v4288_v37 = vld [vmem:[%s5393_s3 + $0x198] sm:$0xff]  }
 0x10b   : > { %v848_v41 = vadd.f32 %v4610_v22, %v847_v40  ;;  %v4073_v42 = vpop.f32.mrb[6].mxu1  ;;  %2133 = vmatprep.mubr.bf16.mxu0 %v1158_v38  ;;  %v4683_v38 = vpop.f32.mrb[2].mxu0  ;;  %v4291_v40 = vld [vmem:[%s5393_s3 + $0x1e0] sm:$0xff]  }
 0x10c   : > { %v964_v43 = vmax.f32 %v856_v39, 0.0  ;;  %v859_v44 = vadd.f32 %v4073_v42, %v4610_v22  ;;  %v850_v45 = vpop.f32.mrb[7].mxu1 }
 0x10d   : > { %v962_v46 = vmax.f32 %v848_v41, 0.0  ;;  %v851_v47 = vadd.f32 %v4610_v22, %v850_v45  ;;  %v1223_v61 = vld [vmem:[#allocation2 + $0x30] sm:$0xff]  ;;  %v4688_v41 = vpop.f32.mrb[3].mxu0 }
 0x10e   : > { %1051 = vst [vmem:[#allocation2 + $0x61] sm:$0xff] %v964_v43  ;;  %v965_v50 = vmax.f32 %v859_v44, 0.0  ;;  %v1221_v52 = vld [vmem:[#allocation2 + $0x18] sm:$0xff] }
 0x10f   : > { %1049 = vst [vmem:[#allocation2 + $0x49] sm:$0xff] %v962_v46  ;;  %v4626_v51 = vmax.f32 %v851_v47, 0.0  ;;  %v1224_v55 = vld [vmem:[#allocation2 + $0x38] sm:$0xff] }
 0x110   : > { %1052 = vst [vmem:[#allocation2 + $0x69] sm:$0xff] %v965_v50  ;;  %v1222_v53 = vld [vmem:[#allocation2 + $0x20] sm:$0xff]  ;;  %v4628_v56 = vpack.c.bf16 %v965_v50, %v964_v43  ;;  %v4639_v1 = vpack.c.bf16 %v1224_v55, %v1223_v61  ;;  %v1177_v42 = vld [vmem:[#allocation2 + $0x32] sm:$0xff] }
 0x111   : > { %1050 = vst [vmem:[#allocation2 + $0x51] sm:$0xff] %v4626_v51  ;;  %v1253_v57 = vpack.c.bf16 %v1222_v53, %v1221_v52  ;;  %v4076_v58 = vpop.f32.mrb[8].mxu1  ;;  %v1160_v59 = vpack.c.bf16 %v4626_v51, %v962_v46  ;;  %v1175_v13 = vld [vmem:[#allocation2 + $0x1a] sm:$0xff]  ;;  %v1176_v14 = vld [vmem:[#allocation2 + $0x22] sm:$0xff]  ;;  %v4697_v52 = vpop.f32.mrb[4].mxu0 }
 0x112   : > { %v872_v62 = vadd.f32 %v4076_v58, %v4610_v22  ;;  %v863_v63 = vpop.f32.mrb[9].mxu1  ;;  %v4666_v24 = vpack.c.bf16 %v1176_v14, %v1175_v13  ;;  %v1178_v43 = vld [vmem:[#allocation2 + $0x3a] sm:$0xff] }
 0x113   : > { %2286 = vmatprep.mubr.bf16.mxu1 %v1253_v57  ;;  %2134 = vmatmul.mubr.bf16.gmra.mrb[36].mxu0 %v1253_v57  ;;  %v864_v2 = vadd.f32 %v4610_v22, %v863_v63  ;;  %v4077_v3 = vpop.f32.mrb[10].mxu1  ;;  %v4292_v50 = vld [vmem:[%s5393_s3 + $0x1a0] sm:$0xff]   ;;  %v4699_v53 = vpack.c.bf16 %v1178_v43, %v1177_v42  ;;  %v4293_v57 = vld [vmem:[%s5393_s3 + $0x1e8] sm:$0xff]   ;;  %v4299_v42 = vld [vmem:[%s5393_s3 + $0x1b8] sm:$0xff]  }
 0x114   : > { %2287 = vmatmul.mubr.bf16.vlgmr.msra.gmra.mrb[32].mxu1 %v1205_v54  ;;  %2141 = vmatprep.mubr.bf16.mxu0 %v1159_v36  ;;  %v968_v4 = vmax.f32 %v872_v62, 0.0  ;;  %v875_v5 = vadd.f32 %v4077_v3, %v4610_v22  ;;  %v866_v6 = vpop.f32.mrb[11].mxu1 }
 0x115   : > { %2294 = vmatprep.mubr.bf16.mxu1 %v4639_v1  ;;  %v966_v7 = vmax.f32 %v864_v2, 0.0  ;;  %v867_v8 = vadd.f32 %v4610_v22, %v866_v6  ;;  %3843 = vmatpush3.bf16.msra.mxu1 %v4276_v60  ;;  %v1227_v45 = vld [vmem:[#allocation2 + $0x60] sm:$0xff] }
 0x116   : > { %1055 = vst [vmem:[#allocation2 + $0x91] sm:$0xff] %v968_v4  ;;  %v969_v10 = vmax.f32 %v875_v5, 0.0  ;;  %v1225_v11 = vld [vmem:[#allocation2 + $0x48] sm:$0xff]  ;;  %3844 = vmatprep.subr.bf16.mxu1 %v4279_v0  ;;  %v4712_v0 = vpop.f32.mrb[5].mxu0 }
 0x117   : > { %1053 = vst [vmem:[#allocation2 + $0x79] sm:$0xff] %v966_v7  ;;  %v4651_v15 = vmax.f32 %v867_v8, 0.0  ;;  %v1228_v46 = vld [vmem:[#allocation2 + $0x68] sm:$0xff]  ;;  %v4719_v5 = vpop.f32.mrb[6].mxu0  ;;  %v4296_v8 = vld [vmem:[%s5393_s3 + $0x1f0] sm:$0xff]  }
 0x118   : > { %1056 = vst [vmem:[#allocation2 + $0x99] sm:$0xff] %v969_v10  ;;  %v1226_v16 = vld [vmem:[#allocation2 + $0x50] sm:$0xff]  ;;  %v4653_v17 = vpack.c.bf16 %v969_v10, %v968_v4  ;;  %v4706_v58 = vpack.c.bf16 %v1228_v46, %v1227_v45  ;;  %v4294_v4 = vld [vmem:[%s5393_s3 + $0x1a8] sm:$0xff]  }
 0x119   : > { %v4655_v18 = vpack.c.bf16 %v1226_v16, %v1225_v11  ;;  %1054 = vst [vmem:[#allocation2 + $0x81] sm:$0xff] %v4651_v15  ;;  %v4080_v19 = vpop.f32.mrb[12].mxu1  ;;  %v4659_v20 = vpack.c.bf16 %v4651_v15, %v966_v7  ;;  %3845 = vmatpush3.bf16.msra.mxu1 %v4280_v9  ;;  %v4724_v9 = vpop.f32.mrb[7].mxu0  ;;  %v1179_v10 = vld [vmem:[#allocation2 + $0x4a] sm:$0xff]  ;;  %v1180_v11 = vld [vmem:[#allocation2 + $0x52] sm:$0xff]  ;;  %v1181_v46 = vld [vmem:[#allocation2 + $0x62] sm:$0xff] }
 0x11a   : > { %v888_v25 = vadd.f32 %v4080_v19, %v4610_v22  ;;  %v879_v26 = vpop.f32.mrb[13].mxu1  ;;  %3846 = vmatprep.subr.bf16.mxu1 %v4283_v12 }
 0x11b   : > { %2142 = vmatmul.mubr.bf16.gmra.mrb[40].mxu0 %v4639_v1  ;;  %v880_v28 = vadd.f32 %v4610_v22, %v879_v26  ;;  %v4081_v29 = vpop.f32.mrb[14].mxu1  ;;  %v4741_v26 = vpack.c.bf16 %v1180_v11, %v1179_v10 }
 0x11c   : > { %2295 = vmatmul.mubr.bf16.gmra.mrb[36].mxu1 %v4666_v24  ;;  %2149 = vmatprep.mubr.bf16.mxu0 %v1160_v59  ;;  %v972_v30 = vmax.f32 %v888_v25, 0.0  ;;  %v891_v31 = vadd.f32 %v4081_v29, %v4610_v22  ;;  %v882_v32 = vpop.f32.mrb[15].mxu1  ;;  %v4739_v25 = vpop.f32.mrb[8].mxu0  ;;  %v4298_v29 = vld [vmem:[%s5393_s3 + $0x1f8] sm:$0xff]  }
 0x11d   : > { %2302 = vmatprep.mubr.bf16.mxu1 %v4655_v18  ;;  %v970_v35 = vmax.f32 %v880_v28, 0.0  ;;  %v883_v36 = vadd.f32 %v4610_v22, %v882_v32  ;;  %3847 = vmatpush3.bf16.msra.mxu1 %v4284_v21  ;;  %v4297_v21 = vld [vmem:[%s5393_s3 + $0x1b0] sm:$0xff]  }
 0x11e   : > { %1059 = vst [vmem:[#allocation2 + $0xc1] sm:$0xff] %v972_v30  ;;  %v973_v39 = vmax.f32 %v891_v31, 0.0  ;;  %3848 = vmatprep.subr.bf16.mxu1 %v4287_v27  ;;  %v1229_v6 = vld [vmem:[#allocation2 + $0x78] sm:$0xff] }
 0x11f   : > { %1057 = vst [vmem:[#allocation2 + $0xa9] sm:$0xff] %v970_v35  ;;  %v971_v44 = vmax.f32 %v883_v36, 0.0 }
 0x120   : > { %1060 = vst [vmem:[#allocation2 + $0xc9] sm:$0xff] %v973_v39  ;;  %v4690_v47 = vpack.c.bf16 %v973_v39, %v972_v30 }
 0x121   : > { %1058 = vst [vmem:[#allocation2 + $0xb1] sm:$0xff] %v971_v44  ;;  %v4084_v48 = vpop.f32.mrb[16].mxu1  ;;  %v4692_v49 = vpack.c.bf16 %v971_v44, %v970_v35  ;;  %3849 = vmatpush3.bf16.msra.mxu1 %v4288_v37  ;;  %v4752_v37 = vpop.f32.mrb[9].mxu0 }
 0x122   : > { %v904_v54 = vadd.f32 %v4084_v48, %v4610_v22  ;;  %v895_v55 = vpop.f32.mrb[17].mxu1  ;;  %3850 = vmatprep.subr.bf16.mxu1 %v4291_v40  ;;  %v4759_v43 = vpop.f32.mrb[10].mxu0  ;;  %v1182_v48 = vld [vmem:[#allocation2 + $0x6a] sm:$0xff] }
 0x123   : > { %2150 = vmatmul.mubr.bf16.gmra.mrb[44].mxu0 %v4655_v18  ;;  %v896_v59 = vadd.f32 %v4610_v22, %v895_v55  ;;  %v4085_v60 = vpop.f32.mrb[18].mxu1  ;;  %5400 = vst [vmem:[#allocation3_spill] sm:$0xff] %v4759_v43  ;;  %v4761_v45 = vpop.f32.mrb[11].mxu0  ;;  %v1232_v55 = vld [vmem:[#allocation2 + $0x98] sm:$0xff] }
 0x124   : > { %2303 = vmatmul.mubr.bf16.gmra.mrb[40].mxu1 %v4699_v53  ;;  %2157 = vmatprep.mubr.bf16.mxu0 %v4628_v56  ;;  %v976_v61 = vmax.f32 %v904_v54, 0.0  ;;  %v907_v62 = vadd.f32 %v4085_v60, %v4610_v22  ;;  %v898_v63 = vpop.f32.mrb[19].mxu1  ;;  %v1230_v56 = vld [vmem:[#allocation2 + $0x80] sm:$0xff]  ;;  %5401 = vst [vmem:[#allocation4_spill] sm:$0xff] %v4761_v45  ;;  %v1231_v54 = vld [vmem:[#allocation2 + $0x90] sm:$0xff] }
 0x125   : > { %2310 = vmatprep.mubr.bf16.mxu1 %v4706_v58  ;;  %v974_v2 = vmax.f32 %v896_v59, 0.0  ;;  %v899_v3 = vadd.f32 %v4610_v22, %v898_v63  ;;  %3851 = vmatpush3.bf16.msra.mxu1 %v4292_v50  ;;  %v4730_v14 = vpack.c.bf16 %v1230_v56, %v1229_v6 }
 0x126   : > { %1063 = vst [vmem:[#allocation2 + $0xf1] sm:$0xff] %v976_v61  ;;  %v977_v7 = vmax.f32 %v907_v62, 0.0  ;;  %3852 = vmatprep.subr.bf16.mxu1 %v4293_v57  ;;  %v4773_v62 = vpack.c.bf16 %v1182_v48, %v1181_v46 }
 0x127   : > { %1061 = vst [vmem:[#allocation2 + $0xd9] sm:$0xff] %v974_v2  ;;  %v4726_v12 = vmax.f32 %v899_v3, 0.0  ;;  %v4777_v3 = vpack.c.bf16 %v1232_v55, %v1231_v54 }
 0x128   : > { %1064 = vst [vmem:[#allocation2 + $0xf9] sm:$0xff] %v977_v7  ;;  %v4728_v13 = vpack.c.bf16 %v977_v7, %v976_v61  ;;  %v4771_v61 = vpop.f32.mrb[12].mxu0 }
 0x129   : > { %1062 = vst [vmem:[#allocation2 + $0xe1] sm:$0xff] %v4726_v12  ;;  %v4088_v16 = vpop.f32.mrb[20].mxu1  ;;  %v4734_v19 = vpack.c.bf16 %v4726_v12, %v974_v2  ;;  %3853 = vmatpush3.bf16.msra.mxu1 %v4294_v4  ;;  %5402 = vst [vmem:[#allocation5_spill] sm:$0xff] %v4771_v61  ;;  %v4783_v10 = vpop.f32.mrb[13].mxu0 }
 0x12a   : > { %v920_v27 = vadd.f32 %v4088_v16, %v4610_v22  ;;  %v911_v28 = vpop.f32.mrb[21].mxu1  ;;  %3854 = vmatprep.subr.bf16.mxu1 %v4296_v8  ;;  %5403 = vst [vmem:[#allocation6_spill] sm:$0xff] %v4783_v10 }
 0x12b   : > { %2158 = vmatmul.mubr.bf16.gmra.mrb[48].mxu0 %v4706_v58  ;;  %v912_v30 = vadd.f32 %v4610_v22, %v911_v28  ;;  %v4089_v31 = vpop.f32.mrb[22].mxu1  ;;  %v1234_v28 = vld [vmem:[#allocation2 + $0xb0] sm:$0xff] }
 0x12c   : > { %2311 = vmatmul.mubr.bf16.gmra.mrb[44].mxu1 %v4741_v26  ;;  %2165 = vmatprep.mubr.bf16.mxu0 %v4659_v20  ;;  %v980_v32 = vmax.f32 %v920_v27, 0.0  ;;  %v923_v35 = vadd.f32 %v4089_v31, %v4610_v22  ;;  %v914_v36 = vpop.f32.mrb[23].mxu1  ;;  %v1233_v27 = vld [vmem:[#allocation2 + $0xa8] sm:$0xff] }
 0x12d   : > { %2318 = vmatprep.mubr.bf16.mxu1 %v4730_v14  ;;  %v978_v39 = vmax.f32 %v912_v30, 0.0  ;;  %v915_v40 = vadd.f32 %v4610_v22, %v914_v36  ;;  %3855 = vmatpush3.bf16.msra.mxu1 %v4297_v21  ;;  %v4787_v21 = vpop.f32.mrb[14].mxu0  ;;  %v1184_v31 = vld [vmem:[#allocation2 + $0x82] sm:$0xff]  ;;  %v4795_v36 = vpack.c.bf16 %v1234_v28, %v1233_v27  ;;  %v1186_v27 = vld [vmem:[#allocation2 + $0x9a] sm:$0xff] }
 0x12e   : > { %1067 = vst [vmem:[#allocation2 + $0x121] sm:$0xff] %v980_v32  ;;  %v981_v44 = vmax.f32 %v923_v35, 0.0  ;;  %3856 = vmatprep.subr.bf16.mxu1 %v4298_v29  ;;  %5404 = vst [vmem:[#allocation7_spill] sm:$0xff] %v4787_v21  ;;  %v4789_v30 = vpop.f32.mrb[15].mxu0  ;;  %v1415_v21 = vld [vmem:[#allocation2 + $0x39] sm:$0xff] }
 0x12f   : > { %1065 = vst [vmem:[#allocation2 + $0x109] sm:$0xff] %v978_v39  ;;  %v4763_v50 = vmax.f32 %v915_v40, 0.0  ;;  %5405 = vst [vmem:[#allocation8_spill] sm:$0xff] %v4789_v30  ;;  %v1269_v30 = vld [vmem:[#allocation2 + $0x19] sm:$0xff] }
 0x130   : > { %1068 = vst [vmem:[#allocation2 + $0x129] sm:$0xff] %v981_v44  ;;  %v4765_v57 = vpack.c.bf16 %v981_v44, %v980_v32 }
 0x131   : > { %1066 = vst [vmem:[#allocation2 + $0x111] sm:$0xff] %v4763_v50  ;;  %v4092_v59 = vpop.f32.mrb[24].mxu1  ;;  %v4769_v60 = vpack.c.bf16 %v4763_v50, %v978_v39  ;;  %3857 = vmatpush3.bf16.msra.mxu1 %v4299_v42  ;;  %v4801_v42 = vpop.f32.mrb[16].mxu0 }
 0x132   : > { %v936_v63 = vadd.f32 %v4092_v59, %v4610_v22  ;;  %v927_v2 = vpop.f32.mrb[25].mxu1  ;;  %5406 = vst [vmem:[#allocation9_spill] sm:$0xff] %v4801_v42 }
 0x133   : > { %2166 = vmatmul.mubr.bf16.gmra.mrb[52].mxu0 %v4730_v14  ;;  %v928_v4 = vadd.f32 %v4610_v22, %v927_v2  ;;  %v4093_v6 = vpop.f32.mrb[26].mxu1 }
 0x134   : > { %2319 = vmatmul.mubr.bf16.gmra.mrb[48].mxu1 %v4773_v62  ;;  %2173 = vmatprep.mubr.bf16.mxu0 %v4653_v17  ;;  %v984_v56 = vmax.f32 %v936_v63, 0.0  ;;  %v939_v7 = vadd.f32 %v4093_v6, %v4610_v22  ;;  %v930_v8 = vpop.f32.mrb[27].mxu1  ;;  %v1183_v17 = vld [vmem:[#allocation2 + $0x7a] sm:$0xff] }
 0x135   : > { %2326 = vmatprep.mubr.bf16.mxu1 %v4777_v3  ;;  %v982_v11 = vmax.f32 %v928_v4, 0.0  ;;  %v931_v16 = vadd.f32 %v4610_v22, %v930_v8  ;;  %v4803_v44 = vpack.c.bf16 %v1184_v31, %v1183_v17  ;;  %v4811_v4 = vpop.f32.mrb[17].mxu0  ;;  %v1236_v17 = vld [vmem:[#allocation2 + $0xc8] sm:$0xff] }
 0x136   : > { %1071 = vst [vmem:[#allocation2 + $0x151] sm:$0xff] %v984_v56  ;;  %v985_v29 = vmax.f32 %v939_v7, 0.0  ;;  %5407 = vst [vmem:[#allocation10_spill] sm:$0xff] %v4811_v4  ;;  %v4815_v7 = vpop.f32.mrb[18].mxu0 }
 0x137   : > { %1069 = vst [vmem:[#allocation2 + $0x139] sm:$0xff] %v982_v11  ;;  %v4791_v32 = vmax.f32 %v931_v16, 0.0  ;;  %5408 = vst [vmem:[#allocation11_spill] sm:$0xff] %v4815_v7  ;;  %v1185_v16 = vld [vmem:[#allocation2 + $0x92] sm:$0xff] }
 0x138   : > { %1072 = vst [vmem:[#allocation2 + $0x159] sm:$0xff] %v985_v29  ;;  %v4793_v35 = vpack.c.bf16 %v985_v29, %v984_v56  ;;  %v1235_v29 = vld [vmem:[#allocation2 + $0xc0] sm:$0xff] }
 0x139   : > { %1070 = vst [vmem:[#allocation2 + $0x141] sm:$0xff] %v4791_v32  ;;  %v4096_v39 = vpop.f32.mrb[28].mxu1  ;;  %v4799_v40 = vpack.c.bf16 %v4791_v32, %v982_v11  ;;  %v4817_v11 = vpop.f32.mrb[19].mxu0 }
 0x13a   : > { %v952_v46 = vadd.f32 %v4096_v39, %v4610_v22  ;;  %v943_v48 = vpop.f32.mrb[29].mxu1  ;;  %5409 = vst [vmem:[#allocation12_spill] sm:$0xff] %v4817_v11  ;;  %v4821_v39 = vpop.f32.mrb[20].mxu0  ;;  %v1196_v11 = vld [vmem:[#allocation2 + $0x112] sm:$0xff] }
 0x13b   : > { %2174 = vmatmul.mubr.bf16.gmra.mrb[56].mxu0 %v4777_v3  ;;  %v944_v54 = vadd.f32 %v4610_v22, %v943_v48  ;;  %v4097_v55 = vpop.f32.mrb[30].mxu1  ;;  %5410 = vst [vmem:[#allocation13_spill] sm:$0xff] %v4821_v39  ;;  %v4830_v48 = vpop.f32.mrb[21].mxu0 }
 0x13c   : > { %2327 = vmatmul.mubr.bf16.gmra.mrb[52].mxu1 %v4803_v44  ;;  %2181 = vmatprep.mubr.bf16.mxu0 %v4692_v49  ;;  %v988_v59 = vmax.f32 %v952_v46, 0.0  ;;  %v955_v63 = vadd.f32 %v4097_v55, %v4610_v22  ;;  %v946_v2 = vpop.f32.mrb[31].mxu1  ;;  %v4823_v46 = vpack.c.bf16 %v1186_v27, %v1185_v16  ;;  %5411 = vst [vmem:[#allocation14_spill] sm:$0xff] %v4830_v48  ;;  %v1237_v55 = vld [vmem:[#allocation2 + $0xd8] sm:$0xff] }
 0x13d   : > { %2334 = vmatprep.mubr.bf16.mxu1 %v4795_v36  ;;  %v986_v6 = vmax.f32 %v944_v54, 0.0  ;;  %v947_v56 = vadd.f32 %v4610_v22, %v946_v2  ;;  %v4826_v22 = vpack.c.bf16 %v1236_v17, %v1235_v29  ;;  %v4833_v54 = vpop.f32.mrb[22].mxu0  ;;  %v1187_v2 = vld [vmem:[#allocation2 + $0xaa] sm:$0xff]  ;;  %v1189_v29 = vld [vmem:[#allocation2 + $0xc2] sm:$0xff]  ;;  %v1194_v48 = vld [vmem:[#allocation2 + $0xfa] sm:$0xff] }
 0x13e   : > { %1075 = vst [vmem:[#allocation2 + $0x181] sm:$0xff] %v988_v59  ;;  %v989_v8 = vmax.f32 %v955_v63, 0.0  ;;  %5412 = vst [vmem:[#allocation15_spill] sm:$0xff] %v4833_v54  ;;  %v1238_v59 = vld [vmem:[#allocation2 + $0xe0] sm:$0xff]  ;;  %v4835_v63 = vpop.f32.mrb[23].mxu0  ;;  %v1190_v17 = vld [vmem:[#allocation2 + $0xca] sm:$0xff] }
 0x13f   : > { %1073 = vst [vmem:[#allocation2 + $0x169] sm:$0xff] %v986_v6  ;;  %v987_v28 = vmax.f32 %v947_v56, 0.0  ;;  %5413 = vst [vmem:[#allocation16_spill] sm:$0xff] %v4835_v63  ;;  %v4837_v56 = vpack.c.bf16 %v1238_v59, %v1237_v55  ;;  %v1239_v55 = vld [vmem:[#allocation2 + $0xf0] sm:$0xff]  ;;  %v1240_v59 = vld [vmem:[#allocation2 + $0xf8] sm:$0xff] }
 0x140   : > { %1076 = vst [vmem:[#allocation2 + $0x189] sm:$0xff] %v989_v8  ;;  %v4839_v8 = vpop.f32.mrb[24].mxu0  ;;  %v1193_v54 = vld [vmem:[#allocation2 + $0xf2] sm:$0xff]  ;;  %v1200_v7 = vld [vmem:[#allocation2 + $0x142] sm:$0xff] }
 0x141   : > { %1074 = vst [vmem:[#allocation2 + $0x171] sm:$0xff] %v987_v28  ;;  %v4819_v31 = vpack.c.bf16 %v987_v28, %v986_v6  ;;  %v1188_v6 = vld [vmem:[#allocation2 + $0xb2] sm:$0xff]  ;;  %5414 = vst [vmem:[#allocation17_spill] sm:$0xff] %v4839_v8  ;;  %v4858_v8 = vpack.c.bf16 %v1240_v59, %v1239_v55 }
 0x142   : > { %v4841_v16 = vpack.c.bf16 %v1188_v6, %v1187_v2  ;;  %v4855_v6 = vpack.c.bf16 %v1190_v17, %v1189_v29  ;;  %v1191_v29 = vld [vmem:[#allocation2 + $0xda] sm:$0xff]  ;;  %v1192_v17 = vld [vmem:[#allocation2 + $0xe2] sm:$0xff] }
 0x143   : > { %2182 = vmatmul.mubr.bf16.gmra.mrb[60].mxu0 %v4795_v36  ;;  %v4871_v55 = vpack.c.bf16 %v1192_v17, %v1191_v29  ;;  %v1244_v29 = vld [vmem:[#allocation2 + $0x128] sm:$0xff]  ;;  %v4881_v17 = vpack.c.bf16 %v1194_v48, %v1193_v54  ;;  %v1247_v54 = vld [vmem:[#allocation2 + $0x150] sm:$0xff] }
 0x144   : > { %2335 = vmatmul.mubr.bf16.gmra.mrb[56].mxu1 %v4823_v46  ;;  %2189 = vmatprep.mubr.bf16.mxu0 %v4690_v47  ;;  %v4846_v47 = vpop.f32.mrb[25].mxu0  ;;  %v1197_v48 = vld [vmem:[#allocation2 + $0x122] sm:$0xff] }
 0x145   : > { %2342 = vmatprep.mubr.bf16.mxu1 %v4826_v22  ;;  %5415 = vst [vmem:[#allocation18_spill] sm:$0xff] %v4846_v47  ;;  %v4849_v27 = vpop.f32.mrb[26].mxu0  ;;  %v1242_v47 = vld [vmem:[#allocation2 + $0x110] sm:$0xff] }
 0x146   : > { %5416 = vst [vmem:[#allocation19_spill] sm:$0xff] %v4849_v27  ;;  %v4851_v28 = vpop.f32.mrb[27].mxu0  ;;  %v1241_v27 = vld [vmem:[#allocation2 + $0x108] sm:$0xff] }
 0x147   : > { %5417 = vst [vmem:[#allocation20_spill] sm:$0xff] %v4851_v28  ;;  %v4853_v2 = vpop.f32.mrb[28].mxu0 }
 0x148   : > { %5418 = vst [vmem:[#allocation21_spill] sm:$0xff] %v4853_v2  ;;  %v4869_v2 = vpack.c.bf16 %v1242_v47, %v1241_v27  ;;  %v1243_v27 = vld [vmem:[#allocation2 + $0x120] sm:$0xff] }
 0x149   : > { %v4884_v39 = vpack.c.bf16 %v1244_v29, %v1243_v27  ;;  %v1248_v27 = vld [vmem:[#allocation2 + $0x158] sm:$0xff] }
 0x14b   : > { %2190 = vmatmul.mubr.bf16.gmra.mrb[64].mxu0 %v4826_v22 }
 0x14c   : > { %2343 = vmatmul.mubr.bf16.gmra.mrb[60].mxu1 %v4841_v16  ;;  %2197 = vmatprep.mubr.bf16.mxu0 %v4734_v19  ;;  %v4862_v19 = vpop.f32.mrb[29].mxu0 }
 0x14d   : > { %2350 = vmatprep.mubr.bf16.mxu1 %v4837_v56  ;;  %5419 = vst [vmem:[#allocation22_spill] sm:$0xff] %v4862_v19  ;;  %v4865_v28 = vpop.f32.mrb[30].mxu0 }
 0x14e   : > { %5420 = vst [vmem:[#allocation23_spill] sm:$0xff] %v4865_v28  ;;  %v4867_v63 = vpop.f32.mrb[31].mxu0 }
 0x14f   : > { %5421 = vst [vmem:[#allocation24_spill] sm:$0xff] %v4867_v63  ;;  %v3522_v59 = vpop.f32.mrb[32].mxu0 }
 0x153   : > { %2198 = vmatmul.mubr.bf16.gmra.mrb[68].mxu0 %v4837_v56 }
 0x154   : > { %2351 = vmatmul.mubr.bf16.gmra.mrb[64].mxu1 %v4855_v6  ;;  %2205 = vmatprep.mubr.bf16.mxu0 %v4728_v13  ;;  %v3523_v13 = vpop.f32.mrb[33].mxu0 }
 0x155   : > { %2358 = vmatprep.mubr.bf16.mxu1 %v4858_v8  ;;  %v4877_v28 = vadd.f32 %v3523_v13, %v3522_v59  ;;  %v3525_v19 = vpop.f32.mrb[34].mxu0  ;;  %v1246_v59 = vld [vmem:[#allocation2 + $0x140] sm:$0xff]  ;;  %v1195_v13 = vld [vmem:[#allocation2 + $0x10a] sm:$0xff] }
 0x156   : > { %v3526_v63 = vpop.f32.mrb[35].mxu0 }
 0x157   : > { %v4879_v47 = vadd.f32 %v3526_v63, %v3525_v19  ;;  %v4891_v19 = vpack.c.bf16 %v1196_v11, %v1195_v13  ;;  %v1249_v11 = vld [vmem:[#allocation2 + $0x168] sm:$0xff]  ;;  %v1199_v13 = vld [vmem:[#allocation2 + $0x13a] sm:$0xff] }
 0x158   : > { %v4907_v42 = vpack.c.bf16 %v1200_v7, %v1199_v13  ;;  %v1270_v7 = vld [vmem:[#allocation2 + $0x21] sm:$0xff]  ;;  %v1204_v13 = vld [vmem:[#allocation2 + $0x172] sm:$0xff] }
 0x159   : > { %v1301_v10 = vpack.c.bf16 %v1270_v7, %v1269_v30  ;;  %v1416_v30 = vld [vmem:[#allocation2 + $0x49] sm:$0xff] }
 0x15a   : > { %v1419_v7 = vld [vmem:[#allocation2 + $0x69] sm:$0xff] }
 0x15b   : > { %2206 = vmatmul.mubr.bf16.gmra.mrb[72].mxu0 %v4858_v8 }
 0x15c   : > { %2359 = vmatmul.mubr.bf16.gmra.mrb[68].mxu1 %v4871_v55  ;;  %2213 = vmatprep.mubr.bf16.mxu0 %v4769_v60  ;;  %v1245_v60 = vld [vmem:[#allocation2 + $0x138] sm:$0xff] }
 0x15d   : > { %2366 = vmatprep.mubr.bf16.mxu1 %v4869_v2  ;;  %v4889_v63 = vpack.c.bf16 %v1246_v59, %v1245_v60  ;;  %v4900_v60 = vpack.c.bf16 %v1248_v27, %v1247_v54  ;;  %v1250_v59 = vld [vmem:[#allocation2 + $0x170] sm:$0xff]  ;;  %v1252_v54 = vld [vmem:[#allocation2 + $0x188] sm:$0xff] }
 0x15e   : > { %v4905_v4 = vpack.c.bf16 %v1250_v59, %v1249_v11  ;;  %v1203_v59 = vld [vmem:[#allocation2 + $0x16a] sm:$0xff] }
 0x15f   : > { %v4921_v61 = vpack.c.bf16 %v1204_v13, %v1203_v59  ;;  %v4306_v13 = vld [vmem:[%s5393_s3 + $0x238] sm:$0xff]  }
 0x163   : > { %2214 = vmatmul.mubr.bf16.gmra.mrb[76].mxu0 %v4869_v2 }
 0x164   : > { %2367 = vmatmul.mubr.bf16.gmra.mrb[72].mxu1 %v4881_v17  ;;  %2221 = vmatprep.mubr.bf16.mxu0 %v4765_v57  ;;  %v1198_v57 = vld [vmem:[#allocation2 + $0x12a] sm:$0xff] }
 0x165   : > { %2374 = vmatprep.mubr.bf16.mxu1 %v4884_v39  ;;  %v4897_v29 = vpack.c.bf16 %v1198_v57, %v1197_v48  ;;  %v1201_v48 = vld [vmem:[#allocation2 + $0x152] sm:$0xff]  ;;  %v1251_v57 = vld [vmem:[#allocation2 + $0x180] sm:$0xff] }
 0x166   : > { %v4916_v11 = vpack.c.bf16 %v1252_v54, %v1251_v57  ;;  %v1418_v54 = vld [vmem:[#allocation2 + $0x61] sm:$0xff] }
 0x16b   : > { %2222 = vmatmul.mubr.bf16.gmra.mrb[80].mxu0 %v4884_v39 }
 0x16c   : > { %2375 = vmatmul.mubr.bf16.gmra.mrb[76].mxu1 %v4891_v19  ;;  %2229 = vmatprep.mubr.bf16.mxu0 %v4799_v40 }
 0x16d   : > { %2382 = vmatprep.mubr.bf16.mxu1 %v4889_v63 }
 0x173   : > { %2230 = vmatmul.mubr.bf16.gmra.mrb[84].mxu0 %v4889_v63 }
 0x174   : > { %2383 = vmatmul.mubr.bf16.gmra.mrb[80].mxu1 %v4897_v29  ;;  %2237 = vmatprep.mubr.bf16.mxu0 %v4793_v35  ;;  %v1202_v35 = vld [vmem:[#allocation2 + $0x15a] sm:$0xff] }
 0x175   : > { %2390 = vmatprep.mubr.bf16.mxu1 %v4900_v60  ;;  %v4913_v27 = vpack.c.bf16 %v1202_v35, %v1201_v48  ;;  %v1414_v48 = vld [vmem:[#allocation2 + $0x31] sm:$0xff]  ;;  %v4300_v35 = vld [vmem:[%s5393_s3 + $0x208] sm:$0xff]  }
 0x176   : > { %v1446_v57 = vpack.c.bf16 %v1415_v21, %v1414_v48  ;;  %v1447_v21 = vpack.c.bf16 %v4626_v51, %v1416_v30  ;;  %v4304_v51 = vld [vmem:[%s5393_s3 + $0x228] sm:$0xff]   ;;  %v1423_v48 = vld [vmem:[#allocation2 + $0x99] sm:$0xff] }
 0x17b   : > { %2238 = vmatmul.mubr.bf16.gmra.mrb[88].mxu0 %v4900_v60 }
 0x17c   : > { %2391 = vmatmul.mubr.bf16.gmra.mrb[84].mxu1 %v4907_v42  ;;  %2245 = vmatprep.mubr.bf16.mxu0 %v4819_v31 }
 0x17d   : > { %2398 = vmatprep.mubr.bf16.mxu1 %v4905_v4 }
 0x183   : > { %2246 = vmatmul.mubr.bf16.gmra.mrb[92].mxu0 %v4905_v4 }
 0x184   : > { %2399 = vmatmul.mubr.bf16.gmra.mrb[88].mxu1 %v4913_v27  ;;  %2447 = vmatprep.mubr.bf16.mxu0 %v4666_v24  ;;  %v4301_v24 = vld [vmem:[%s5393_s3 + $0x210] sm:$0xff]  }
 0x185   : > { %2406 = vmatprep.mubr.bf16.mxu1 %v4916_v11 }
 0x18b   : > { %2448 = vmatmul.mubr.bf16.vlgmr.msra.gmra.mrb[96].mxu0 %v1301_v10  ;;  %v4302_v10 = vld [vmem:[%s5393_s3 + $0x218] sm:$0xff]  }
 0x18c   : > { %2407 = vmatmul.mubr.bf16.gmra.mrb[92].mxu1 %v4921_v61  ;;  %4099 = vmatpush3.bf16.msra.mxu0 %v4619_v33  ;;  %v1274_v33 = vld [vmem:[#allocation2 + $0x51] sm:$0xff] }
 0x18d   : > { %2455 = vmatprep.mubr.bf16.mxu0 %v4699_v53  ;;  %2608 = vmatprep.mubr.bf16.mxu1 %v1446_v57  ;;  %v4303_v53 = vld [vmem:[%s5393_s3 + $0x220] sm:$0xff]   ;;  %v1303_v59 = vpack.c.bf16 %v1274_v33, %v1416_v30 }
 0x18e   : > { %4100 = vmatprep.subr.bf16.mxu0 %v4300_v35 }
 0x190   : > { %4101 = vmatpush3.bf16.msra.mxu0 %v4300_v35 }
 0x191   : > { %4102 = vmatprep.subr.bf16.mxu0 %v4301_v24 }
 0x193   : > { %2456 = vmatmul.mubr.bf16.gmra.mrb[100].mxu0 %v1446_v57 }
 0x194   : > { %2609 = vmatmul.mubr.bf16.vlgmr.msra.gmra.mrb[96].mxu1 %v4639_v1  ;;  %2463 = vmatprep.mubr.bf16.mxu0 %v4741_v26  ;;  %v1448_v1 = vpack.c.bf16 %v1419_v7, %v1418_v54  ;;  %v4305_v26 = vld [vmem:[%s5393_s3 + $0x230] sm:$0xff]  }
 0x195   : > { %2616 = vmatprep.mubr.bf16.mxu1 %v1447_v21  ;;  %4103 = vmatpush3.bf16.msra.mxu0 %v4301_v24  ;;  %v1427_v24 = vld [vmem:[#allocation2 + $0xc9] sm:$0xff]  ;;  %v1438_v7 = vld [vmem:[#allocation2 + $0x151] sm:$0xff] }
 0x196   : > { %4104 = vmatprep.subr.bf16.mxu0 %v4302_v10 }
 0x199   : > { %4105 = vmatpush3.bf16.msra.mxu0 %v4302_v10 }
 0x19a   : > { %4106 = vmatprep.subr.bf16.mxu0 %v4303_v53 }
 0x19b   : > { %2464 = vmatmul.mubr.bf16.gmra.mrb[104].mxu0 %v1303_v59  ;;  %v1439_v59 = vld [vmem:[#allocation2 + $0x159] sm:$0xff] }
 0x19c   : > { %2617 = vmatmul.mubr.bf16.gmra.mrb[100].mxu1 %v4655_v18  ;;  %2471 = vmatprep.mubr.bf16.mxu0 %v4773_v62  ;;  %v1277_v18 = vld [vmem:[#allocation2 + $0x79] sm:$0xff]  ;;  %v1422_v62 = vld [vmem:[#allocation2 + $0x91] sm:$0xff] }
 0x19d   : > { %2624 = vmatprep.mubr.bf16.mxu1 %v1448_v1  ;;  %4107 = vmatpush3.bf16.msra.mxu0 %v4303_v53  ;;  %v1305_v35 = vpack.c.bf16 %v4651_v15, %v1277_v18  ;;  %v1450_v57 = vpack.c.bf16 %v1423_v48, %v1422_v62  ;;  %v4307_v18 = vld [vmem:[%s5395_s5] sm:$0xff]  }
 0x19e   : > { %4108 = vmatprep.subr.bf16.mxu0 %v4304_v51  ;;  %4146 = vmatprep.subr.bf16.mxu1 %v4307_v18 }
 0x19f   : > { %4147 = vmatpush3.bf16.msra.mxu1 %v4307_v18  ;;  %v1444_v18 = vld [vmem:[#allocation2 + $0x199] sm:$0xff] }
 0x1a1   : > { %4109 = vmatpush3.bf16.msra.mxu0 %v4304_v51 }
 0x1a2   : > { %4110 = vmatprep.subr.bf16.mxu0 %v4305_v26 }
 0x1a3   : > { %2472 = vmatmul.mubr.bf16.gmra.mrb[108].mxu0 %v1448_v1 }
 0x1a4   : > { %2625 = vmatmul.mubr.bf16.gmra.mrb[104].mxu1 %v4706_v58  ;;  %2479 = vmatprep.mubr.bf16.mxu0 %v4803_v44  ;;  %v1282_v58 = vld [vmem:[#allocation2 + $0xb1] sm:$0xff]  ;;  %v1426_v44 = vld [vmem:[#allocation2 + $0xc1] sm:$0xff] }
 0x1a5   : > { %2632 = vmatprep.mubr.bf16.mxu1 %v4659_v20  ;;  %4111 = vmatpush3.bf16.msra.mxu0 %v4305_v26  ;;  %v1281_v20 = vld [vmem:[#allocation2 + $0xa9] sm:$0xff]  ;;  %v1452_v30 = vpack.c.bf16 %v1427_v24, %v1426_v44 }
 0x1a6   : > { %4112 = vmatprep.subr.bf16.mxu0 %v4306_v13  ;;  %v1307_v15 = vpack.c.bf16 %v1282_v58, %v1281_v20 }
 0x1a9   : > { %4113 = vmatpush3.bf16.msra.mxu0 %v4306_v13 }
 0x1ab   : > { %2480 = vmatmul.mubr.bf16.gmra.mrb[112].mxu0 %v1305_v35 }
 0x1ac   : > { %2633 = vmatmul.mubr.bf16.gmra.mrb[108].mxu1 %v4730_v14  ;;  %2487 = vmatprep.mubr.bf16.mxu0 %v4823_v46  ;;  %v1428_v14 = vld [vmem:[#allocation2 + $0xd9] sm:$0xff]  ;;  %v1430_v46 = vld [vmem:[#allocation2 + $0xf1] sm:$0xff] }
 0x1ad   : > { %2640 = vmatprep.mubr.bf16.mxu1 %v1450_v57 }
 0x1b3   : > { %2488 = vmatmul.mubr.bf16.gmra.mrb[116].mxu0 %v1450_v57  ;;  %v1458_v57 = vpack.c.bf16 %v1439_v59, %v1438_v7 }
 0x1b4   : > { %2641 = vmatmul.mubr.bf16.gmra.mrb[112].mxu1 %v4777_v3  ;;  %2495 = vmatprep.mubr.bf16.mxu0 %v4841_v16  ;;  %v1453_v3 = vpack.c.bf16 %v4726_v12, %v1428_v14  ;;  %v1431_v16 = vld [vmem:[#allocation2 + $0xf9] sm:$0xff] }
 0x1b5   : > { %2648 = vmatprep.mubr.bf16.mxu1 %v4692_v49  ;;  %v1286_v49 = vld [vmem:[#allocation2 + $0xe1] sm:$0xff]  ;;  %v1454_v21 = vpack.c.bf16 %v1431_v16, %v1430_v46 }
 0x1b6   : > { %v1309_v10 = vpack.c.bf16 %v1286_v49, %v1428_v14 }
 0x1bb   : > { %2496 = vmatmul.mubr.bf16.gmra.mrb[120].mxu0 %v1307_v15 }
 0x1bc   : > { %2649 = vmatmul.mubr.bf16.gmra.mrb[116].mxu1 %v4795_v36  ;;  %2503 = vmatprep.mubr.bf16.mxu0 %v4855_v6  ;;  %v1432_v36 = vld [vmem:[#allocation2 + $0x109] sm:$0xff]  ;;  %v1434_v6 = vld [vmem:[#allocation2 + $0x121] sm:$0xff] }
 0x1bd   : > { %2656 = vmatprep.mubr.bf16.mxu1 %v1452_v30  ;;  %v1455_v12 = vpack.c.bf16 %v4763_v50, %v1432_v36  ;;  %v4979_v50 = vld [vmem:[%s5394_s4] ss:$0 sm:$0xff] }
 0x1be   : > { %v2131_v62 = vadd.f32 %v4879_v47, %v4979_v50 }
 0x1c3   : > { %2504 = vmatmul.mubr.bf16.gmra.mrb[124].mxu0 %v1452_v30 }
 0x1c4   : > { %2657 = vmatmul.mubr.bf16.gmra.mrb[120].mxu1 %v4826_v22  ;;  %2511 = vmatprep.mubr.bf16.mxu0 %v4871_v55  ;;  %v1290_v22 = vld [vmem:[#allocation2 + $0x111] sm:$0xff]  ;;  %v1435_v55 = vld [vmem:[#allocation2 + $0x129] sm:$0xff] }
 0x1c5   : > { %2664 = vmatprep.mubr.bf16.mxu1 %v1453_v3  ;;  %v1311_v33 = vpack.c.bf16 %v1290_v22, %v1432_v36  ;;  %v1456_v53 = vpack.c.bf16 %v1435_v55, %v1434_v6  ;;  %v1297_v36 = vld [vmem:[#allocation2 + $0x169] sm:$0xff] }
 0x1c6   : > { %v1347_v55 = vld [vmem:[#allocation2 + $0x182] sm:$0xff] }
 0x1cb   : > { %2512 = vmatmul.mubr.bf16.gmra.mrb[128].mxu0 %v1309_v10 }
 0x1cc   : > { %2665 = vmatmul.mubr.bf16.gmra.mrb[124].mxu1 %v4837_v56  ;;  %2519 = vmatprep.mubr.bf16.mxu0 %v4881_v17 }
 0x1cd   : > { %2672 = vmatprep.mubr.bf16.mxu1 %v1454_v21 }
 0x1d3   : > { %2520 = vmatmul.mubr.bf16.gmra.mrb[132].mxu0 %v1454_v21 }
 0x1d4   : > { %2673 = vmatmul.mubr.bf16.gmra.mrb[128].mxu1 %v4858_v8  ;;  %2527 = vmatprep.mubr.bf16.mxu0 %v4891_v19  ;;  %v1293_v8 = vld [vmem:[#allocation2 + $0x139] sm:$0xff] }
 0x1d5   : > { %2680 = vmatprep.mubr.bf16.mxu1 %v1455_v12  ;;  %v1313_v1 = vpack.c.bf16 %v4791_v32, %v1293_v8  ;;  %v1298_v12 = vld [vmem:[#allocation2 + $0x171] sm:$0xff] }
 0x1db   : > { %2528 = vmatmul.mubr.bf16.gmra.mrb[136].mxu0 %v1311_v33  ;;  %v1348_v33 = vld [vmem:[#allocation2 + $0x18a] sm:$0xff] }
 0x1dc   : > { %2681 = vmatmul.mubr.bf16.gmra.mrb[132].mxu1 %v4869_v2  ;;  %2535 = vmatprep.mubr.bf16.mxu0 %v4897_v29  ;;  %v5005_v59 = vpack.c.bf16 %v1348_v33, %v1347_v55 }
 0x1dd   : > { %2688 = vmatprep.mubr.bf16.mxu1 %v1456_v53 }
 0x1e3   : > { %2536 = vmatmul.mubr.bf16.gmra.mrb[140].mxu0 %v1456_v53 }
 0x1e4   : > { %2689 = vmatmul.mubr.bf16.gmra.mrb[136].mxu1 %v4884_v39  ;;  %2543 = vmatprep.mubr.bf16.mxu0 %v4907_v42  ;;  %v2128_v39 = vadd.f32 %v4877_v28, %v4979_v50 }
 0x1e5   : > { %2696 = vmatprep.mubr.bf16.mxu1 %v4799_v40 }
 0x1e6   : > { %v3528_v56 = vpop.f32.mrb[36].mxu0 }
 0x1e7   : > { %v3634_v17 = vpop.f32.mrb[32].mxu1  ;;  %v3529_v19 = vpop.f32.mrb[37].mxu0 }
 0x1e8   : > { %v3530_v2 = vadd.f32 %v3529_v19, %v3528_v56  ;;  %v3635_v54 = vpop.f32.mrb[33].mxu1  ;;  %v3531_v29 = vpop.f32.mrb[38].mxu0  ;;  %v1443_v19 = vld [vmem:[#allocation2 + $0x189] sm:$0xff] }
 0x1e9   : > { %v3636_v42 = vadd.f32 %v3635_v54, %v3634_v17  ;;  %v3637_v51 = vpop.f32.mrb[34].mxu1  ;;  %v3532_v40 = vpop.f32.mrb[39].mxu0  ;;  %v1442_v17 = vld [vmem:[#allocation2 + $0x181] sm:$0xff] }
 0x1ea   : > { %v3533_v26 = vadd.f32 %v3532_v40, %v3531_v29  ;;  %v3638_v13 = vpop.f32.mrb[35].mxu1  ;;  %v2136_v15 = vadd.f32 %v3530_v2, %v4979_v50  ;;  %v1315_v29 = vpack.c.bf16 %v1298_v12, %v1297_v36 }
 0x1eb   : > { %v4989_v48 = vadd.f32 %v3636_v42, %v2128_v39  ;;  %v3639_v35 = vadd.f32 %v3638_v13, %v3637_v51  ;;  %2544 = vmatmul.mubr.bf16.gmra.mrb[144].mxu0 %v1313_v1  ;;  %v4308_v39 = vld [vmem:[%s5395_s5 + $0x8] sm:$0xff]   ;;  %v1460_v1 = vpack.c.bf16 %v1443_v19, %v1442_v17 }
 0x1ec   : > { %2697 = vmatmul.mubr.bf16.gmra.mrb[140].mxu1 %v4889_v63  ;;  %2551 = vmatprep.mubr.bf16.mxu0 %v4913_v27  ;;  %v2139_v27 = vadd.f32 %v3533_v26, %v4979_v50 }
 0x1ed   : > { %v4993_v28 = vadd.f32 %v3639_v35, %v2131_v62  ;;  %2704 = vmatprep.mubr.bf16.mxu1 %v1458_v57  ;;  %4148 = vmatprep.subr.bf16.mxu1 %v4308_v39  ;;  %v1445_v62 = vld [vmem:[#allocation2 + $0x1a1] sm:$0xff] }
 0x1ee   : > { %v3534_v32 = vpop.f32.mrb[40].mxu0  ;;  %4149 = vmatpush3.bf16.msra.mxu1 %v4308_v39 }
 0x1ef   : > { %v3640_v20 = vpop.f32.mrb[36].mxu1  ;;  %v3535_v58 = vpop.f32.mrb[41].mxu0 }
 0x1f0   : > { %v3536_v44 = vadd.f32 %v3535_v58, %v3534_v32  ;;  %v3641_v24 = vpop.f32.mrb[37].mxu1  ;;  %v3537_v47 = vpop.f32.mrb[42].mxu0  ;;  %v1462_v32 = vld [vmem:[#allocation2 + $0x32] sm:$0xff] }
 0x1f1   : > { %v3642_v30 = vadd.f32 %v3641_v24, %v3640_v20  ;;  %v3643_v14 = vpop.f32.mrb[38].mxu1  ;;  %v3538_v3 = vpop.f32.mrb[43].mxu0  ;;  %v1463_v20 = vld [vmem:[#allocation2 + $0x3a] sm:$0xff] }
 0x1f2   : > { %v3539_v49 = vadd.f32 %v3538_v3, %v3537_v47  ;;  %v3644_v63 = vpop.f32.mrb[39].mxu1 }
 0x1f3   : > { %v4997_v46 = vadd.f32 %v3642_v30, %v2136_v15  ;;  %v3645_v16 = vadd.f32 %v3644_v63, %v3643_v14  ;;  %2552 = vmatmul.mubr.bf16.gmra.mrb[148].mxu0 %v1458_v57  ;;  %v1461_v14 = vpack.c.bf16 %v1445_v62, %v1444_v18  ;;  %v1494_v63 = vpack.c.bf16 %v1463_v20, %v1462_v32  ;;  %v1469_v32 = vld [vmem:[#allocation2 + $0x82] sm:$0xff] }
 0x1f4   : > { %2705 = vmatmul.mubr.bf16.gmra.mrb[144].mxu1 %v4900_v60  ;;  %2559 = vmatprep.mubr.bf16.mxu0 %v4921_v61  ;;  %v2144_v60 = vadd.f32 %v3536_v44, %v4979_v50  ;;  %v2147_v42 = vadd.f32 %v3539_v49, %v4979_v50 }
 0x1f5   : > { %v5001_v10 = vadd.f32 %v3645_v16, %v2139_v27  ;;  %2712 = vmatprep.mubr.bf16.mxu1 %v4819_v31 }
 0x1f6   : > { %v3540_v21 = vpop.f32.mrb[44].mxu0 }
 0x1f7   : > { %v3646_v22 = vpop.f32.mrb[40].mxu1  ;;  %v3541_v6 = vpop.f32.mrb[45].mxu0 }
 0x1f8   : > { %v3542_v53 = vadd.f32 %v3541_v6, %v3540_v21  ;;  %v3647_v56 = vpop.f32.mrb[41].mxu1  ;;  %v3543_v8 = vpop.f32.mrb[46].mxu0  ;;  %v1465_v6 = vld [vmem:[#allocation2 + $0x52] sm:$0xff] }
 0x1f9   : > { %v3648_v2 = vadd.f32 %v3647_v56, %v3646_v22  ;;  %v3649_v61 = vpop.f32.mrb[42].mxu1  ;;  %v3544_v54 = vpop.f32.mrb[47].mxu0  ;;  %v1464_v22 = vld [vmem:[#allocation2 + $0x4a] sm:$0xff] }
 0x1fa   : > { %v3545_v7 = vadd.f32 %v3544_v54, %v3543_v8  ;;  %v3650_v31 = vpop.f32.mrb[43].mxu1  ;;  %v2152_v47 = vadd.f32 %v3542_v53, %v4979_v50  ;;  %v1466_v53 = vld [vmem:[#allocation2 + $0x62] sm:$0xff]  ;;  %v1467_v56 = vld [vmem:[#allocation2 + $0x6a] sm:$0xff] }
 0x1fb   : > { %v5011_v51 = vadd.f32 %v3648_v2, %v2144_v60  ;;  %v3651_v40 = vadd.f32 %v3650_v31, %v3649_v61  ;;  %2560 = vmatmul.mubr.bf16.gmra.mrb[152].mxu0 %v1315_v29  ;;  %v4315_v60 = vld [vmem:[#allocation2] sm:$0xff] }
 0x1fc   : > { %2713 = vmatmul.mubr.bf16.gmra.mrb[148].mxu1 %v4905_v4  ;;  %2567 = vmatprep.mubr.bf16.mxu0 %v5005_v59  ;;  %v2155_v27 = vadd.f32 %v3545_v7, %v4979_v50  ;;  %v1413_v2 = vpack.c.bf16 %v4315_v60, %v4315_v60  ;;  %v1495_v7 = vpack.c.bf16 %v1465_v6, %v1464_v22  ;;  %v1474_v60 = vld [vmem:[#allocation2 + $0xc2] sm:$0xff] }
 0x1fd   : > { %v5015_v26 = vadd.f32 %v3651_v40, %v2147_v42  ;;  %2720 = vmatprep.mubr.bf16.mxu1 %v1460_v1  ;;  %v1496_v42 = vpack.c.bf16 %v1467_v56, %v1466_v53  ;;  %v4309_v40 = vld [vmem:[%s5395_s5 + $0x10] sm:$0xff]  }
 0x1fe   : > { %v3546_v13 = vpop.f32.mrb[48].mxu0  ;;  %4150 = vmatprep.subr.bf16.mxu1 %v4309_v40  ;;  %v1472_v56 = vld [vmem:[#allocation2 + $0xaa] sm:$0xff] }
 0x1ff   : > { %v3652_v35 = vpop.f32.mrb[44].mxu1  ;;  %v3547_v57 = vpop.f32.mrb[49].mxu0  ;;  %4151 = vmatpush3.bf16.msra.mxu1 %v4309_v40 }
 0x200   : > { %v3548_v58 = vadd.f32 %v3547_v57, %v3546_v13  ;;  %v3653_v44 = vpop.f32.mrb[45].mxu1  ;;  %v3549_v24 = vpop.f32.mrb[50].mxu0  ;;  %v1468_v57 = vld [vmem:[#allocation2 + $0x7a] sm:$0xff] }
 0x201   : > { %v3654_v4 = vadd.f32 %v3653_v44, %v3652_v35  ;;  %v3655_v15 = vpop.f32.mrb[46].mxu1  ;;  %v3550_v30 = vpop.f32.mrb[51].mxu0  ;;  %v1470_v44 = vld [vmem:[#allocation2 + $0x92] sm:$0xff] }
 0x202   : > { %v3551_v3 = vadd.f32 %v3550_v30, %v3549_v24  ;;  %v3656_v49 = vpop.f32.mrb[47].mxu1  ;;  %v2160_v61 = vadd.f32 %v3548_v58, %v4979_v50  ;;  %v1471_v24 = vld [vmem:[#allocation2 + $0x9a] sm:$0xff] }
 0x203   : > { %v5019_v16 = vadd.f32 %v3654_v4, %v2152_v47  ;;  %v3657_v21 = vadd.f32 %v3656_v49, %v3655_v15  ;;  %2568 = vmatmul.mubr.bf16.gmra.mrb[156].mxu0 %v1460_v1 }
 0x204   : > { %2721 = vmatmul.mubr.bf16.gmra.mrb[152].mxu1 %v4916_v11  ;;  %4114 = vmatprep.mubr.bf16.mxu0 %v1494_v63  ;;  %v2163_v1 = vadd.f32 %v3551_v3, %v4979_v50  ;;  %v1497_v63 = vpack.c.bf16 %v1469_v32, %v1468_v57 }
 0x205   : > { %v5022_v36 = vadd.f32 %v3657_v21, %v2155_v27  ;;  %2728 = vmatprep.mubr.bf16.mxu1 %v1461_v14 }
 0x206   : > { %v3552_v12 = vpop.f32.mrb[52].mxu0 }
 0x207   : > { %v3658_v55 = vpop.f32.mrb[48].mxu1  ;;  %v3553_v33 = vpop.f32.mrb[53].mxu0 }
 0x208   : > { %v3554_v8 = vadd.f32 %v3553_v33, %v3552_v12  ;;  %v3659_v17 = vpop.f32.mrb[49].mxu1  ;;  %v3555_v19 = vpop.f32.mrb[54].mxu0  ;;  %v1498_v12 = vpack.c.bf16 %v1471_v24, %v1470_v44  ;;  %v1476_v24 = vld [vmem:[#allocation2 + $0xda] sm:$0xff] }
 0x209   : > { %v3660_v54 = vadd.f32 %v3659_v17, %v3658_v55  ;;  %v3661_v11 = vpop.f32.mrb[50].mxu1  ;;  %v3556_v29 = vpop.f32.mrb[55].mxu0  ;;  %v1473_v17 = vld [vmem:[#allocation2 + $0xb2] sm:$0xff] }
 0x20a   : > { %v3557_v31 = vadd.f32 %v3556_v29, %v3555_v19  ;;  %v3662_v39 = vpop.f32.mrb[51].mxu1  ;;  %v2168_v30 = vadd.f32 %v3554_v8, %v4979_v50 }
 0x20b   : > { %v5029_v13 = vadd.f32 %v3660_v54, %v2160_v61  ;;  %v3663_v18 = vadd.f32 %v3662_v39, %v3661_v11  ;;  %4115 = vmatmul.mubr.bf16.vlgmr.msra.gmra.mrb[160].mxu0 %v1495_v7 }
 0x20c   : > { %2729 = vmatmul.mubr.bf16.gmra.mrb[156].mxu1 %v1413_v2  ;;  %4118 = vmatprep.mubr.bf16.mxu0 %v1496_v42  ;;  %v2171_v22 = vadd.f32 %v3557_v31, %v4979_v50  ;;  %v1475_v2 = vld [vmem:[#allocation2 + $0xca] sm:$0xff]  ;;  %v1499_v42 = vpack.c.bf16 %v1473_v17, %v1472_v56 }
 0x20d   : > { %v5031_v62 = vadd.f32 %v3663_v18, %v2163_v1  ;;  %v1500_v18 = vpack.c.bf16 %v1475_v2, %v1474_v60 }
 0x20e   : > { %v3558_v35 = vpop.f32.mrb[56].mxu0 }
 0x20f   : > { %v3664_v20 = vpop.f32.mrb[52].mxu1  ;;  %v3559_v58 = vpop.f32.mrb[57].mxu0 }
 0x210   : > { %v3560_v47 = vadd.f32 %v3559_v58, %v3558_v35  ;;  %v3665_v4 = vpop.f32.mrb[53].mxu1  ;;  %v3561_v15 = vpop.f32.mrb[58].mxu0  ;;  %v4310_v35 = vld [vmem:[%s5395_s5 + $0x18] sm:$0xff]  }
 0x211   : > { %v3666_v14 = vadd.f32 %v3665_v4, %v3664_v20  ;;  %v3667_v3 = vpop.f32.mrb[54].mxu1  ;;  %v3562_v49 = vpop.f32.mrb[59].mxu0  ;;  %4152 = vmatprep.subr.bf16.mxu1 %v4310_v35 }
 0x212   : > { %v3563_v27 = vadd.f32 %v3562_v49, %v3561_v15  ;;  %v3668_v21 = vpop.f32.mrb[55].mxu1  ;;  %v2176_v29 = vadd.f32 %v3560_v47, %v4979_v50  ;;  %4153 = vmatpush3.bf16.msra.mxu1 %v4310_v35  ;;  %v1477_v47 = vld [vmem:[#allocation2 + $0xe2] sm:$0xff] }
 0x213   : > { %v5035_v6 = vadd.f32 %v3666_v14, %v2168_v30  ;;  %v3669_v55 = vadd.f32 %v3668_v21, %v3667_v3  ;;  %4119 = vmatmul.mubr.bf16.gmra.mrb[164].mxu0 %v1497_v63  ;;  %v1478_v30 = vld [vmem:[#allocation2 + $0xf2] sm:$0xff]  ;;  %v1479_v14 = vld [vmem:[#allocation2 + $0xfa] sm:$0xff] }
 0x214   : > { %4122 = vmatprep.mubr.bf16.mxu0 %v1498_v12  ;;  %v2179_v57 = vadd.f32 %v3563_v27, %v4979_v50  ;;  %v1502_v17 = vpack.c.bf16 %v1479_v14, %v1478_v30 }
 0x215   : > { %v5037_v33 = vadd.f32 %v3669_v55, %v2171_v22  ;;  %v1501_v55 = vpack.c.bf16 %v1477_v47, %v1476_v24 }
 0x216   : > { %v3564_v53 = vpop.f32.mrb[60].mxu0 }
 0x217   : > { %v3670_v8 = vpop.f32.mrb[56].mxu1  ;;  %v3565_v19 = vpop.f32.mrb[61].mxu0 }
 0x218   : > { %v3566_v61 = vadd.f32 %v3565_v19, %v3564_v53  ;;  %v3671_v54 = vpop.f32.mrb[57].mxu1  ;;  %v3567_v11 = vpop.f32.mrb[62].mxu0 }
 0x219   : > { %v3672_v7 = vadd.f32 %v3671_v54, %v3670_v8  ;;  %v3673_v31 = vpop.f32.mrb[58].mxu1  ;;  %v3568_v39 = vpop.f32.mrb[63].mxu0 }
 0x21a   : > { %v3569_v40 = vadd.f32 %v3568_v39, %v3567_v11  ;;  %v3674_v1 = vpop.f32.mrb[59].mxu1  ;;  %v2184_v27 = vadd.f32 %v3566_v61, %v4979_v50  ;;  %v1480_v11 = vld [vmem:[#allocation2 + $0x10a] sm:$0xff] }
 0x21b   : > { %v5044_v32 = vadd.f32 %v3672_v7, %v2176_v29  ;;  %v3675_v20 = vadd.f32 %v3674_v1, %v3673_v31  ;;  %4123 = vmatmul.mubr.bf16.gmra.mrb[168].mxu0 %v1499_v42  ;;  %v1481_v29 = vld [vmem:[#allocation2 + $0x112] sm:$0xff]  ;;  %v1482_v31 = vld [vmem:[#allocation2 + $0x122] sm:$0xff]  ;;  %v1483_v39 = vld [vmem:[#allocation2 + $0x12a] sm:$0xff] }
 0x21c   : > { %4126 = vmatprep.mubr.bf16.mxu0 %v1500_v18  ;;  %v2187_v8 = vadd.f32 %v3569_v40, %v4979_v50 }
 0x21d   : > { %v5046_v58 = vadd.f32 %v3675_v20, %v2179_v57 }
 0x21e   : > { %v3570_v44 = vpop.f32.mrb[64].mxu0 }
 0x21f   : > { %v3676_v4 = vpop.f32.mrb[60].mxu1  ;;  %v3571_v15 = vpop.f32.mrb[65].mxu0 }
 0x220   : > { %v3572_v3 = vadd.f32 %v3571_v15, %v3570_v44  ;;  %v3677_v49 = vpop.f32.mrb[61].mxu1  ;;  %v3573_v63 = vpop.f32.mrb[66].mxu0  ;;  %v1503_v44 = vpack.c.bf16 %v1481_v29, %v1480_v11  ;;  %v4311_v15 = vld [vmem:[%s5395_s5 + $0x20] sm:$0xff]  }
 0x221   : > { %v3678_v21 = vadd.f32 %v3677_v49, %v3676_v4  ;;  %v3679_v12 = vpop.f32.mrb[62].mxu1  ;;  %v3574_v22 = vpop.f32.mrb[67].mxu0  ;;  %v1504_v4 = vpack.c.bf16 %v1483_v39, %v1482_v31  ;;  %4154 = vmatprep.subr.bf16.mxu1 %v4311_v15 }
 0x222   : > { %v3575_v53 = vadd.f32 %v3574_v22, %v3573_v63  ;;  %v3680_v56 = vpop.f32.mrb[63].mxu1  ;;  %v2192_v35 = vadd.f32 %v3572_v3, %v4979_v50  ;;  %4155 = vmatpush3.bf16.msra.mxu1 %v4311_v15 }
 0x223   : > { %v5050_v19 = vadd.f32 %v3678_v21, %v2184_v27  ;;  %v3681_v60 = vadd.f32 %v3680_v56, %v3679_v12  ;;  %4127 = vmatmul.mubr.bf16.gmra.mrb[172].mxu0 %v1501_v55  ;;  %v1484_v27 = vld [vmem:[#allocation2 + $0x13a] sm:$0xff]  ;;  %v1485_v21 = vld [vmem:[#allocation2 + $0x142] sm:$0xff]  ;;  %v1486_v55 = vld [vmem:[#allocation2 + $0x152] sm:$0xff] }
 0x224   : > { %4130 = vmatprep.mubr.bf16.mxu0 %v1502_v17  ;;  %v2195_v30 = vadd.f32 %v3575_v53, %v4979_v50  ;;  %v1487_v56 = vld [vmem:[#allocation2 + $0x15a] sm:$0xff] }
 0x225   : > { %v5052_v2 = vadd.f32 %v3681_v60, %v2187_v8  ;;  %v1506_v39 = vpack.c.bf16 %v1487_v56, %v1486_v55  ;;  %v4312_v55 = vld [vmem:[%s5395_s5 + $0x28] sm:$0xff]  }
 0x226   : > { %v3576_v54 = vpop.f32.mrb[68].mxu0  ;;  %4156 = vmatprep.subr.bf16.mxu1 %v4312_v55 }
 0x227   : > { %v3682_v61 = vpop.f32.mrb[64].mxu1  ;;  %v3577_v7 = vpop.f32.mrb[69].mxu0  ;;  %4157 = vmatpush3.bf16.msra.mxu1 %v4312_v55 }
 0x228   : > { %v3578_v42 = vadd.f32 %v3577_v7, %v3576_v54  ;;  %v3683_v1 = vpop.f32.mrb[65].mxu1  ;;  %v3579_v18 = vpop.f32.mrb[70].mxu0 }
 0x229   : > { %v3684_v40 = vadd.f32 %v3683_v1, %v3682_v61  ;;  %v3685_v57 = vpop.f32.mrb[66].mxu1  ;;  %v3580_v20 = vpop.f32.mrb[71].mxu0  ;;  %v1505_v61 = vpack.c.bf16 %v1485_v21, %v1484_v27 }
 0x22a   : > { %v3581_v24 = vadd.f32 %v3580_v20, %v3579_v18  ;;  %v3686_v47 = vpop.f32.mrb[67].mxu1  ;;  %v2200_v53 = vadd.f32 %v3578_v42, %v4979_v50  ;;  %v1488_v20 = vld [vmem:[#allocation2 + $0x16a] sm:$0xff] }
 0x22b   : > { %v5059_v14 = vadd.f32 %v3684_v40, %v2192_v35  ;;  %v3687_v49 = vadd.f32 %v3686_v47, %v3685_v57  ;;  %4131 = vmatmul.mubr.bf16.gmra.mrb[176].mxu0 %v1503_v44  ;;  %v1489_v44 = vld [vmem:[#allocation2 + $0x172] sm:$0xff] }
 0x22c   : > { %4134 = vmatprep.mubr.bf16.mxu0 %v1504_v4  ;;  %v2203_v1 = vadd.f32 %v3581_v24, %v4979_v50  ;;  %v1507_v21 = vpack.c.bf16 %v1489_v44, %v1488_v20 }
 0x22d   : > { %v5061_v3 = vadd.f32 %v3687_v49, %v2195_v30 }
 0x22e   : > { %v3582_v63 = vpop.f32.mrb[72].mxu0 }
 0x22f   : > { %v3688_v12 = vpop.f32.mrb[68].mxu1  ;;  %v3583_v22 = vpop.f32.mrb[73].mxu0 }
 0x230   : > { %v3584_v17 = vadd.f32 %v3583_v22, %v3582_v63  ;;  %v3689_v8 = vpop.f32.mrb[69].mxu1  ;;  %v3585_v60 = vpop.f32.mrb[74].mxu0 }
 0x231   : > { %v3690_v54 = vadd.f32 %v3689_v8, %v3688_v12  ;;  %v3691_v11 = vpop.f32.mrb[70].mxu1  ;;  %v3586_v29 = vpop.f32.mrb[75].mxu0 }
 0x232   : > { %v3587_v7 = vadd.f32 %v3586_v29, %v3585_v60  ;;  %v3692_v31 = vpop.f32.mrb[71].mxu1  ;;  %v2208_v49 = vadd.f32 %v3584_v17, %v4979_v50  ;;  %v1493_v17 = vld [vmem:[#allocation2 + $0x1a2] sm:$0xff] }
 0x233   : > { %v5065_v18 = vadd.f32 %v3690_v54, %v2200_v53  ;;  %v3693_v35 = vadd.f32 %v3692_v31, %v3691_v11  ;;  %4135 = vmatmul.mubr.bf16.gmra.mrb[180].mxu0 %v1505_v61  ;;  %v1492_v53 = vld [vmem:[#allocation2 + $0x19a] sm:$0xff] }
 0x234   : > { %4138 = vmatprep.mubr.bf16.mxu0 %v1506_v39  ;;  %v2211_v56 = vadd.f32 %v3587_v7, %v4979_v50  ;;  %v1509_v31 = vpack.c.bf16 %v1493_v17, %v1492_v53 }
 0x235   : > { %v5067_v40 = vadd.f32 %v3693_v35, %v2203_v1 }
 0x236   : > { %v3588_v57 = vpop.f32.mrb[76].mxu0 }
 0x237   : > { %v3694_v42 = vpop.f32.mrb[72].mxu1  ;;  %v3589_v47 = vpop.f32.mrb[77].mxu0 }
 0x238   : > { %v3590_v4 = vadd.f32 %v3589_v47, %v3588_v57  ;;  %v3695_v15 = vpop.f32.mrb[73].mxu1  ;;  %v3591_v30 = vpop.f32.mrb[78].mxu0 }
 0x239   : > { %v3696_v63 = vadd.f32 %v3695_v15, %v3694_v42  ;;  %v3697_v27 = vpop.f32.mrb[74].mxu1  ;;  %v3592_v24 = vpop.f32.mrb[79].mxu0 }
 0x23a   : > { %v3593_v12 = vadd.f32 %v3592_v24, %v3591_v30  ;;  %v3698_v22 = vpop.f32.mrb[75].mxu1  ;;  %v2216_v7 = vadd.f32 %v3590_v4, %v4979_v50 }
 0x23b   : > { %v5074_v8 = vadd.f32 %v3696_v63, %v2208_v49  ;;  %v3699_v60 = vadd.f32 %v3698_v22, %v3697_v27  ;;  %4139 = vmatmul.mubr.bf16.gmra.mrb[184].mxu0 %v1507_v21 }
 0x23c   : > { %4142 = vmatprep.mubr.bf16.mxu0 %v5005_v59  ;;  %v2219_v47 = vadd.f32 %v3593_v12, %v4979_v50  ;;  %v4313_v12 = vld [vmem:[%s5395_s5 + $0x30] sm:$0xff]  }
 0x23d   : > { %v5077_v54 = vadd.f32 %v3699_v60, %v2211_v56  ;;  %4158 = vmatprep.subr.bf16.mxu1 %v4313_v12 }
 0x23e   : > { %v3594_v11 = vpop.f32.mrb[80].mxu0  ;;  %4159 = vmatpush3.bf16.msra.mxu1 %v4313_v12 }
 0x23f   : > { %v3700_v29 = vpop.f32.mrb[76].mxu1  ;;  %v3595_v61 = vpop.f32.mrb[81].mxu0 }
 0x240   : > { %v3596_v39 = vadd.f32 %v3595_v61, %v3594_v11  ;;  %v3701_v1 = vpop.f32.mrb[77].mxu1  ;;  %v3597_v35 = vpop.f32.mrb[82].mxu0 }
 0x241   : > { %v3702_v57 = vadd.f32 %v3701_v1, %v3700_v29  ;;  %v3703_v20 = vpop.f32.mrb[78].mxu1  ;;  %v3598_v44 = vpop.f32.mrb[83].mxu0 }
 0x242   : > { %v3599_v42 = vadd.f32 %v3598_v44, %v3597_v35  ;;  %v3704_v59 = vpop.f32.mrb[79].mxu1  ;;  %v2224_v4 = vadd.f32 %v3596_v39, %v4979_v50 }
 0x243   : > { %v5081_v15 = vadd.f32 %v3702_v57, %v2216_v7  ;;  %v3705_v30 = vadd.f32 %v3704_v59, %v3703_v20  ;;  %4143 = vmatmul.mubr.bf16.gmra.mrb[188].mxu0 %v1509_v31 }
 0x244   : > { %v2227_v29 = vadd.f32 %v3599_v42, %v4979_v50 }
 0x245   : > { %v5083_v49 = vadd.f32 %v3705_v30, %v2219_v47 }
 0x246   : > { %v3600_v63 = vpop.f32.mrb[84].mxu0 }
 0x247   : > { %v3706_v27 = vpop.f32.mrb[80].mxu1  ;;  %v3601_v24 = vpop.f32.mrb[85].mxu0 }
 0x248   : > { %v3602_v21 = vadd.f32 %v3601_v24, %v3600_v63  ;;  %v3707_v22 = vpop.f32.mrb[81].mxu1  ;;  %v3603_v55 = vpop.f32.mrb[86].mxu0 }
 0x249   : > { %v3708_v56 = vadd.f32 %v3707_v22, %v3706_v27  ;;  %v3709_v60 = vpop.f32.mrb[82].mxu1  ;;  %v3604_v53 = vpop.f32.mrb[87].mxu0 }
 0x24a   : > { %v3605_v17 = vadd.f32 %v3604_v53, %v3603_v55  ;;  %v3710_v11 = vpop.f32.mrb[83].mxu1  ;;  %v2232_v59 = vadd.f32 %v3602_v21, %v4979_v50 }
 0x24b   : > { %v5090_v61 = vadd.f32 %v3708_v56, %v2224_v4  ;;  %v3711_v31 = vadd.f32 %v3710_v11, %v3709_v60 }
 0x24c   : > { %v2235_v24 = vadd.f32 %v3605_v17, %v4979_v50  ;;  %v4314_v17 = vld [vmem:[%s5395_s5 + $0x38] sm:$0xff]  }
 0x24d   : > { %v5092_v1 = vadd.f32 %v3711_v31, %v2227_v29  ;;  %4160 = vmatprep.subr.bf16.mxu1 %v4314_v17 }
 0x24e   : > { %v3606_v35 = vpop.f32.mrb[88].mxu0  ;;  %4161 = vmatpush3.bf16.msra.mxu1 %v4314_v17 }
 0x24f   : > { %v3712_v39 = vpop.f32.mrb[84].mxu1  ;;  %v3607_v7 = vpop.f32.mrb[89].mxu0 }
 0x250   : > { %v3608_v57 = vadd.f32 %v3607_v7, %v3606_v35  ;;  %v3713_v20 = vpop.f32.mrb[85].mxu1  ;;  %v3609_v44 = vpop.f32.mrb[90].mxu0 }
 0x251   : > { %v3714_v47 = vadd.f32 %v3713_v20, %v3712_v39  ;;  %v3715_v30 = vpop.f32.mrb[86].mxu1  ;;  %v3610_v63 = vpop.f32.mrb[91].mxu0 }
 0x252   : > { %v3611_v27 = vadd.f32 %v3610_v63, %v3609_v44  ;;  %v3716_v42 = vpop.f32.mrb[87].mxu1  ;;  %v2240_v21 = vadd.f32 %v3608_v57, %v4979_v50 }
 0x253   : > { %v5096_v22 = vadd.f32 %v3714_v47, %v2232_v59  ;;  %v3717_v55 = vadd.f32 %v3716_v42, %v3715_v30 }
 0x254   : > { %v2243_v44 = vadd.f32 %v3611_v27, %v4979_v50 }
 0x255   : > { %v5098_v4 = vadd.f32 %v3717_v55, %v2235_v24 }
 0x256   : > { %v3612_v56 = vpop.f32.mrb[92].mxu0 }
 0x257   : > { %v3718_v60 = vpop.f32.mrb[88].mxu1  ;;  %v3613_v53 = vpop.f32.mrb[93].mxu0 }
 0x258   : > { %v3614_v11 = vadd.f32 %v3613_v53, %v3612_v56  ;;  %v3719_v12 = vpop.f32.mrb[89].mxu1  ;;  %v3615_v29 = vpop.f32.mrb[94].mxu0 }
 0x259   : > { %v3720_v31 = vadd.f32 %v3719_v12, %v3718_v60  ;;  %v3721_v35 = vpop.f32.mrb[90].mxu1  ;;  %v3616_v39 = vpop.f32.mrb[95].mxu0 }
 0x25a   : > { %v3617_v7 = vadd.f32 %v3616_v39, %v3615_v29  ;;  %v3722_v20 = vpop.f32.mrb[91].mxu1  ;;  %v2248_v60 = vadd.f32 %v3614_v11, %v4979_v50 }
 0x25b   : > { %v5105_v59 = vadd.f32 %v3720_v31, %v2240_v21  ;;  %v3723_v47 = vadd.f32 %v3722_v20, %v3721_v35 }
 0x25c   : > { %v2251_v35 = vadd.f32 %v3617_v7, %v4979_v50 }
 0x25d   : > { %v5107_v30 = vadd.f32 %v3723_v47, %v2243_v44 }
 0x25e   : > { %v3746_v63 = vpop.f32.mrb[96].mxu0 }
 0x25f   : > { %v3724_v57 = vpop.f32.mrb[92].mxu1  ;;  %v3747_v42 = vpop.f32.mrb[97].mxu0 }
 0x260   : > { %v3725_v24 = vpop.f32.mrb[93].mxu1  ;;  %v3748_v55 = vadd.f32 %v3747_v42, %v3746_v63  ;;  %v3749_v56 = vpop.f32.mrb[98].mxu0 }
 0x261   : > { %v3726_v53 = vadd.f32 %v3725_v24, %v3724_v57  ;;  %v3727_v12 = vpop.f32.mrb[94].mxu1  ;;  %v3750_v29 = vpop.f32.mrb[99].mxu0 }
 0x262   : > { %v2450_v27 = vadd.f32 %v3748_v55, %v4989_v48  ;;  %v3728_v21 = vpop.f32.mrb[95].mxu1  ;;  %v3751_v31 = vadd.f32 %v3750_v29, %v3749_v56 }
 0x263   : > { %v5112_v39 = vadd.f32 %v3726_v53, %v2248_v60  ;;  %v3729_v20 = vadd.f32 %v3728_v21, %v3727_v12 }
 0x264   : > { %v2453_v17 = vadd.f32 %v3751_v31, %v4993_v28 }
 0x265   : > { %v5115_v44 = vadd.f32 %v3729_v20, %v2251_v35 }
 0x266   : > { %v3752_v47 = vpop.f32.mrb[100].mxu0 }
 0x267   : > { %v3858_v63 = vpop.f32.mrb[96].mxu1  ;;  %v3753_v42 = vpop.f32.mrb[101].mxu0 }
 0x268   : > { %v3754_v11 = vadd.f32 %v3753_v42, %v3752_v47  ;;  %v3859_v57 = vpop.f32.mrb[97].mxu1  ;;  %v3755_v24 = vpop.f32.mrb[102].mxu0 }
 0x269   : > { %v3860_v45 = vadd.f32 %v3859_v57, %v3858_v63  ;;  %v3861_v43 = vpop.f32.mrb[98].mxu1  ;;  %v3756_v48 = vpop.f32.mrb[103].mxu0 }
 0x26a   : > { %v2458_v55 = vadd.f32 %v3754_v11, %v4997_v46  ;;  %v3757_v56 = vadd.f32 %v3756_v48, %v3755_v24  ;;  %v3862_v50 = vpop.f32.mrb[99].mxu1 }
 0x26b   : > { %v3863_v7 = vadd.f32 %v3862_v50, %v3861_v43  ;;  %v5118_v60 = vadd.f32 %v3860_v45, %v2450_v27 }
 0x26c   : > { %v2461_v28 = vadd.f32 %v3757_v56, %v5001_v10 }
 0x26d   : > { %v5121_v53 = vadd.f32 %v3863_v7, %v2453_v17 }
 0x26e   : > { %v3758_v12 = vpop.f32.mrb[104].mxu0 }
 0x26f   : > { %v3864_v29 = vpop.f32.mrb[100].mxu1  ;;  %v3759_v21 = vpop.f32.mrb[105].mxu0 }
 0x270   : > { %v3760_v31 = vadd.f32 %v3759_v21, %v3758_v12  ;;  %v3865_v35 = vpop.f32.mrb[101].mxu1  ;;  %v3761_v20 = vpop.f32.mrb[106].mxu0 }
 0x271   : > { %v3866_v47 = vadd.f32 %v3865_v35, %v3864_v29  ;;  %v3867_v63 = vpop.f32.mrb[102].mxu1  ;;  %v3762_v42 = vpop.f32.mrb[107].mxu0 }
 0x272   : > { %v2466_v46 = vadd.f32 %v3760_v31, %v5011_v51  ;;  %v3763_v11 = vadd.f32 %v3762_v42, %v3761_v20  ;;  %v3868_v57 = vpop.f32.mrb[103].mxu1 }
 0x273   : > { %v3869_v43 = vadd.f32 %v3868_v57, %v3867_v63  ;;  %v5124_v45 = vadd.f32 %v3866_v47, %v2458_v55 }
 0x274   : > { %v2469_v10 = vadd.f32 %v3763_v11, %v5015_v26 }
 0x275   : > { %v5127_v27 = vadd.f32 %v3869_v43, %v2461_v28 }
 0x276   : > { %v3764_v17 = vpop.f32.mrb[108].mxu0 }
 0x277   : > { %v3870_v24 = vpop.f32.mrb[104].mxu1  ;;  %v3765_v48 = vpop.f32.mrb[109].mxu0 }
 0x278   : > { %v3766_v56 = vadd.f32 %v3765_v48, %v3764_v17  ;;  %v3871_v50 = vpop.f32.mrb[105].mxu1  ;;  %v3767_v7 = vpop.f32.mrb[110].mxu0 }
 0x279   : > { %v3872_v12 = vadd.f32 %v3871_v50, %v3870_v24  ;;  %v3873_v29 = vpop.f32.mrb[106].mxu1  ;;  %v3768_v21 = vpop.f32.mrb[111].mxu0 }
 0x27a   : > { %v2474_v51 = vadd.f32 %v3766_v56, %v5019_v16  ;;  %v3769_v31 = vadd.f32 %v3768_v21, %v3767_v7  ;;  %v3874_v35 = vpop.f32.mrb[107].mxu1 }
 0x27b   : > { %v3875_v20 = vadd.f32 %v3874_v35, %v3873_v29  ;;  %v5130_v55 = vadd.f32 %v3872_v12, %v2466_v46 }
 0x27c   : > { %v2477_v26 = vadd.f32 %v3769_v31, %v5022_v36 }
 0x27d   : > { %v5133_v28 = vadd.f32 %v3875_v20, %v2469_v10 }
 0x27e   : > { %v3770_v47 = vpop.f32.mrb[112].mxu0 }
 0x27f   : > { %v3876_v63 = vpop.f32.mrb[108].mxu1  ;;  %v3771_v42 = vpop.f32.mrb[113].mxu0 }
 0x280   : > { %v3772_v11 = vadd.f32 %v3771_v42, %v3770_v47  ;;  %v3877_v57 = vpop.f32.mrb[109].mxu1  ;;  %v3773_v43 = vpop.f32.mrb[114].mxu0 }
 0x281   : > { %v3878_v17 = vadd.f32 %v3877_v57, %v3876_v63  ;;  %v3879_v24 = vpop.f32.mrb[110].mxu1  ;;  %v3774_v48 = vpop.f32.mrb[115].mxu0 }
 0x282   : > { %v2482_v16 = vadd.f32 %v3772_v11, %v5029_v13  ;;  %v3775_v56 = vadd.f32 %v3774_v48, %v3773_v43  ;;  %v3880_v50 = vpop.f32.mrb[111].mxu1 }
 0x283   : > { %v3881_v7 = vadd.f32 %v3880_v50, %v3879_v24  ;;  %v5136_v46 = vadd.f32 %v3878_v17, %v2474_v51 }
 0x284   : > { %v2485_v36 = vadd.f32 %v3775_v56, %v5031_v62 }
 0x285   : > { %v5139_v10 = vadd.f32 %v3881_v7, %v2477_v26 }
 0x286   : > { %v3776_v12 = vpop.f32.mrb[116].mxu0 }
 0x287   : > { %v3882_v29 = vpop.f32.mrb[112].mxu1  ;;  %v3777_v21 = vpop.f32.mrb[117].mxu0 }
 0x288   : > { %v3778_v31 = vadd.f32 %v3777_v21, %v3776_v12  ;;  %v3883_v35 = vpop.f32.mrb[113].mxu1  ;;  %v3779_v20 = vpop.f32.mrb[118].mxu0 }
 0x289   : > { %v3884_v47 = vadd.f32 %v3883_v35, %v3882_v29  ;;  %v3885_v63 = vpop.f32.mrb[114].mxu1  ;;  %v3780_v42 = vpop.f32.mrb[119].mxu0 }
 0x28a   : > { %v2490_v13 = vadd.f32 %v3778_v31, %v5035_v6  ;;  %v3781_v11 = vadd.f32 %v3780_v42, %v3779_v20  ;;  %v3886_v57 = vpop.f32.mrb[115].mxu1 }
 0x28b   : > { %v3887_v43 = vadd.f32 %v3886_v57, %v3885_v63  ;;  %v5142_v51 = vadd.f32 %v3884_v47, %v2482_v16 }
 0x28c   : > { %v2493_v62 = vadd.f32 %v3781_v11, %v5037_v33 }
 0x28d   : > { %v5145_v26 = vadd.f32 %v3887_v43, %v2485_v36 }
 0x28e   : > { %v3782_v17 = vpop.f32.mrb[120].mxu0 }
 0x28f   : > { %v3888_v24 = vpop.f32.mrb[116].mxu1  ;;  %v3783_v48 = vpop.f32.mrb[121].mxu0 }
 0x290   : > { %v3784_v56 = vadd.f32 %v3783_v48, %v3782_v17  ;;  %v3889_v50 = vpop.f32.mrb[117].mxu1  ;;  %v3785_v7 = vpop.f32.mrb[122].mxu0 }
 0x291   : > { %v3890_v12 = vadd.f32 %v3889_v50, %v3888_v24  ;;  %v3891_v29 = vpop.f32.mrb[118].mxu1  ;;  %v3786_v21 = vpop.f32.mrb[123].mxu0 }
 0x292   : > { %v2498_v6 = vadd.f32 %v3784_v56, %v5044_v32  ;;  %v3787_v31 = vadd.f32 %v3786_v21, %v3785_v7  ;;  %v3892_v35 = vpop.f32.mrb[119].mxu1 }
 0x293   : > { %v3893_v20 = vadd.f32 %v3892_v35, %v3891_v29  ;;  %v5148_v16 = vadd.f32 %v3890_v12, %v2490_v13 }
 0x294   : > { %v2501_v33 = vadd.f32 %v3787_v31, %v5046_v58 }
 0x295   : > { %v5151_v36 = vadd.f32 %v3893_v20, %v2493_v62 }
 0x296   : > { %v3788_v47 = vpop.f32.mrb[124].mxu0 }
 0x297   : > { %v3894_v63 = vpop.f32.mrb[120].mxu1  ;;  %v3789_v42 = vpop.f32.mrb[125].mxu0 }
 0x298   : > { %v3790_v11 = vadd.f32 %v3789_v42, %v3788_v47  ;;  %v3895_v57 = vpop.f32.mrb[121].mxu1  ;;  %v3791_v43 = vpop.f32.mrb[126].mxu0 }
 0x299   : > { %v3896_v17 = vadd.f32 %v3895_v57, %v3894_v63  ;;  %v3897_v24 = vpop.f32.mrb[122].mxu1  ;;  %v3792_v48 = vpop.f32.mrb[127].mxu0 }
 0x29a   : > { %v2506_v32 = vadd.f32 %v3790_v11, %v5050_v19  ;;  %v3793_v56 = vadd.f32 %v3792_v48, %v3791_v43  ;;  %v3898_v50 = vpop.f32.mrb[123].mxu1 }
 0x29b   : > { %v3899_v7 = vadd.f32 %v3898_v50, %v3897_v24  ;;  %v5154_v13 = vadd.f32 %v3896_v17, %v2498_v6 }
 0x29c   : > { %v2509_v58 = vadd.f32 %v3793_v56, %v5052_v2 }
 0x29d   : > { %v5157_v62 = vadd.f32 %v3899_v7, %v2501_v33 }
 0x29e   : > { %v3794_v12 = vpop.f32.mrb[128].mxu0 }
 0x29f   : > { %v3900_v29 = vpop.f32.mrb[124].mxu1  ;;  %v3795_v21 = vpop.f32.mrb[129].mxu0 }
 0x2a0   : > { %v3796_v31 = vadd.f32 %v3795_v21, %v3794_v12  ;;  %v3901_v35 = vpop.f32.mrb[125].mxu1  ;;  %v3797_v20 = vpop.f32.mrb[130].mxu0 }
 0x2a1   : > { %v3902_v47 = vadd.f32 %v3901_v35, %v3900_v29  ;;  %v3903_v63 = vpop.f32.mrb[126].mxu1  ;;  %v3798_v42 = vpop.f32.mrb[131].mxu0 }
 0x2a2   : > { %v2514_v19 = vadd.f32 %v3796_v31, %v5059_v14  ;;  %v3799_v11 = vadd.f32 %v3798_v42, %v3797_v20  ;;  %v3904_v57 = vpop.f32.mrb[127].mxu1 }
 0x2a3   : > { %v3905_v43 = vadd.f32 %v3904_v57, %v3903_v63  ;;  %v5160_v6 = vadd.f32 %v3902_v47, %v2506_v32 }
 0x2a4   : > { %v2517_v2 = vadd.f32 %v3799_v11, %v5061_v3 }
 0x2a5   : > { %v5163_v33 = vadd.f32 %v3905_v43, %v2509_v58 }
 0x2a6   : > { %v3800_v17 = vpop.f32.mrb[132].mxu0 }
 0x2a7   : > { %v3906_v24 = vpop.f32.mrb[128].mxu1  ;;  %v3801_v48 = vpop.f32.mrb[133].mxu0 }
 0x2a8   : > { %v3802_v56 = vadd.f32 %v3801_v48, %v3800_v17  ;;  %v3907_v50 = vpop.f32.mrb[129].mxu1  ;;  %v3803_v7 = vpop.f32.mrb[134].mxu0 }
 0x2a9   : > { %v3908_v12 = vadd.f32 %v3907_v50, %v3906_v24  ;;  %v3909_v29 = vpop.f32.mrb[130].mxu1  ;;  %v3804_v21 = vpop.f32.mrb[135].mxu0 }
 0x2aa   : > { %v2522_v14 = vadd.f32 %v3802_v56, %v5065_v18  ;;  %v3805_v31 = vadd.f32 %v3804_v21, %v3803_v7  ;;  %v3910_v35 = vpop.f32.mrb[131].mxu1 }
 0x2ab   : > { %v3911_v20 = vadd.f32 %v3910_v35, %v3909_v29  ;;  %v5166_v32 = vadd.f32 %v3908_v12, %v2514_v19 }
 0x2ac   : > { %v2525_v3 = vadd.f32 %v3805_v31, %v5067_v40 }
 0x2ad   : > { %v5169_v58 = vadd.f32 %v3911_v20, %v2517_v2 }
 0x2ae   : > { %v3806_v47 = vpop.f32.mrb[136].mxu0 }
 0x2af   : > { %v3912_v63 = vpop.f32.mrb[132].mxu1  ;;  %v3807_v42 = vpop.f32.mrb[137].mxu0 }
 0x2b0   : > { %v3808_v11 = vadd.f32 %v3807_v42, %v3806_v47  ;;  %v3913_v57 = vpop.f32.mrb[133].mxu1  ;;  %v3809_v43 = vpop.f32.mrb[138].mxu0 }
 0x2b1   : > { %v3914_v17 = vadd.f32 %v3913_v57, %v3912_v63  ;;  %v3915_v24 = vpop.f32.mrb[134].mxu1  ;;  %v3810_v48 = vpop.f32.mrb[139].mxu0 }
 0x2b2   : > { %v2530_v18 = vadd.f32 %v3808_v11, %v5074_v8  ;;  %v3811_v56 = vadd.f32 %v3810_v48, %v3809_v43  ;;  %v3916_v50 = vpop.f32.mrb[135].mxu1 }
 0x2b3   : > { %v3917_v7 = vadd.f32 %v3916_v50, %v3915_v24  ;;  %v5172_v19 = vadd.f32 %v3914_v17, %v2522_v14 }
 0x2b4   : > { %v2533_v40 = vadd.f32 %v3811_v56, %v5077_v54 }
 0x2b5   : > { %v5175_v2 = vadd.f32 %v3917_v7, %v2525_v3 }
 0x2b6   : > { %v3812_v12 = vpop.f32.mrb[140].mxu0 }
 0x2b7   : > { %v3918_v29 = vpop.f32.mrb[136].mxu1  ;;  %v3813_v21 = vpop.f32.mrb[141].mxu0 }
 0x2b8   : > { %v3814_v31 = vadd.f32 %v3813_v21, %v3812_v12  ;;  %v3919_v35 = vpop.f32.mrb[137].mxu1  ;;  %v3815_v20 = vpop.f32.mrb[142].mxu0 }
 0x2b9   : > { %v3920_v47 = vadd.f32 %v3919_v35, %v3918_v29  ;;  %v3921_v63 = vpop.f32.mrb[138].mxu1  ;;  %v3816_v42 = vpop.f32.mrb[143].mxu0 }
 0x2ba   : > { %v2538_v8 = vadd.f32 %v3814_v31, %v5081_v15  ;;  %v3817_v11 = vadd.f32 %v3816_v42, %v3815_v20  ;;  %v3922_v57 = vpop.f32.mrb[139].mxu1 }
 0x2bb   : > { %v3923_v43 = vadd.f32 %v3922_v57, %v3921_v63  ;;  %v5178_v14 = vadd.f32 %v3920_v47, %v2530_v18 }
 0x2bc   : > { %v2541_v54 = vadd.f32 %v3817_v11, %v5083_v49 }
 0x2bd   : > { %v5181_v3 = vadd.f32 %v3923_v43, %v2533_v40 }
 0x2be   : > { %v3818_v17 = vpop.f32.mrb[144].mxu0 }
 0x2bf   : > { %v3924_v24 = vpop.f32.mrb[140].mxu1  ;;  %v3819_v48 = vpop.f32.mrb[145].mxu0 }
 0x2c0   : > { %v3820_v56 = vadd.f32 %v3819_v48, %v3818_v17  ;;  %v3925_v50 = vpop.f32.mrb[141].mxu1  ;;  %v3821_v7 = vpop.f32.mrb[146].mxu0 }
 0x2c1   : > { %v3926_v12 = vadd.f32 %v3925_v50, %v3924_v24  ;;  %v3927_v29 = vpop.f32.mrb[142].mxu1  ;;  %v3822_v21 = vpop.f32.mrb[147].mxu0 }
 0x2c2   : > { %v2546_v15 = vadd.f32 %v3820_v56, %v5090_v61  ;;  %v3823_v31 = vadd.f32 %v3822_v21, %v3821_v7  ;;  %v3928_v35 = vpop.f32.mrb[143].mxu1 }
 0x2c3   : > { %v3929_v20 = vadd.f32 %v3928_v35, %v3927_v29  ;;  %v5184_v18 = vadd.f32 %v3926_v12, %v2538_v8 }
 0x2c4   : > { %v2549_v49 = vadd.f32 %v3823_v31, %v5092_v1 }
 0x2c5   : > { %v5187_v40 = vadd.f32 %v3929_v20, %v2541_v54 }
 0x2c6   : > { %v3824_v47 = vpop.f32.mrb[148].mxu0 }
 0x2c7   : > { %v3930_v63 = vpop.f32.mrb[144].mxu1  ;;  %v3825_v42 = vpop.f32.mrb[149].mxu0 }
 0x2c8   : > { %v3826_v11 = vadd.f32 %v3825_v42, %v3824_v47  ;;  %v3931_v57 = vpop.f32.mrb[145].mxu1  ;;  %v3827_v43 = vpop.f32.mrb[150].mxu0 }
 0x2c9   : > { %v3932_v17 = vadd.f32 %v3931_v57, %v3930_v63  ;;  %v3933_v24 = vpop.f32.mrb[146].mxu1  ;;  %v3828_v48 = vpop.f32.mrb[151].mxu0 }
 0x2ca   : > { %v2554_v61 = vadd.f32 %v3826_v11, %v5096_v22  ;;  %v3829_v56 = vadd.f32 %v3828_v48, %v3827_v43  ;;  %v3934_v50 = vpop.f32.mrb[147].mxu1 }
 0x2cb   : > { %v3935_v7 = vadd.f32 %v3934_v50, %v3933_v24  ;;  %v5190_v8 = vadd.f32 %v3932_v17, %v2546_v15 }
 0x2cc   : > { %v2557_v1 = vadd.f32 %v3829_v56, %v5098_v4 }
 0x2cd   : > { %v5193_v54 = vadd.f32 %v3935_v7, %v2549_v49 }
 0x2ce   : > { %v3830_v12 = vpop.f32.mrb[152].mxu0 }
 0x2cf   : > { %v3936_v29 = vpop.f32.mrb[148].mxu1  ;;  %v3831_v21 = vpop.f32.mrb[153].mxu0 }
 0x2d0   : > { %v3832_v31 = vadd.f32 %v3831_v21, %v3830_v12  ;;  %v3937_v35 = vpop.f32.mrb[149].mxu1  ;;  %v3833_v20 = vpop.f32.mrb[154].mxu0 }
 0x2d1   : > { %v3938_v47 = vadd.f32 %v3937_v35, %v3936_v29  ;;  %v3939_v63 = vpop.f32.mrb[150].mxu1  ;;  %v3834_v42 = vpop.f32.mrb[155].mxu0 }
 0x2d2   : > { %v2562_v22 = vadd.f32 %v3832_v31, %v5105_v59  ;;  %v3835_v11 = vadd.f32 %v3834_v42, %v3833_v20  ;;  %v3940_v57 = vpop.f32.mrb[151].mxu1 }
 0x2d3   : > { %v3941_v43 = vadd.f32 %v3940_v57, %v3939_v63  ;;  %v5196_v15 = vadd.f32 %v3938_v47, %v2554_v61 }
 0x2d4   : > { %v2565_v4 = vadd.f32 %v3835_v11, %v5107_v30 }
 0x2d5   : > { %v5199_v49 = vadd.f32 %v3941_v43, %v2557_v1 }
 0x2d6   : > { %v3836_v17 = vpop.f32.mrb[156].mxu0 }
 0x2d7   : > { %v3942_v24 = vpop.f32.mrb[152].mxu1  ;;  %v3837_v48 = vpop.f32.mrb[157].mxu0 }
 0x2d8   : > { %v3838_v56 = vadd.f32 %v3837_v48, %v3836_v17  ;;  %v3943_v50 = vpop.f32.mrb[153].mxu1  ;;  %v3839_v7 = vpop.f32.mrb[158].mxu0 }
 0x2d9   : > { %v3944_v12 = vadd.f32 %v3943_v50, %v3942_v24  ;;  %v3945_v29 = vpop.f32.mrb[154].mxu1  ;;  %v3840_v21 = vpop.f32.mrb[159].mxu0 }
 0x2da   : > { %v2570_v59 = vadd.f32 %v3838_v56, %v5112_v39  ;;  %v3841_v31 = vadd.f32 %v3840_v21, %v3839_v7  ;;  %v3946_v35 = vpop.f32.mrb[155].mxu1 }
 0x2db   : > { %v3947_v20 = vadd.f32 %v3946_v35, %v3945_v29  ;;  %v5202_v61 = vadd.f32 %v3944_v12, %v2562_v22 }
 0x2dc   : > { %v2573_v30 = vadd.f32 %v3841_v31, %v5115_v44 }
 0x2dd   : > { %v5205_v1 = vadd.f32 %v3947_v20, %v2565_v4 }
 0x2de   : > { %v4116_v47 = vpop.f32.mrb[160].mxu0 }
 0x2df   : > { %v3948_v63 = vpop.f32.mrb[156].mxu1  ;;  %v2780_v42 = vadd.f32 %v4116_v47, %v5124_v45  ;;  %v2771_v11 = vpop.f32.mrb[161].mxu0 }
 0x2e0   : > { %v3949_v57 = vpop.f32.mrb[157].mxu1  ;;  %v2772_v43 = vadd.f32 %v2771_v11, %v5118_v60  ;;  %v4117_v17 = vpop.f32.mrb[162].mxu0 }
 0x2e1   : > { %v3950_v24 = vadd.f32 %v3949_v57, %v3948_v63  ;;  %v3951_v39 = vpop.f32.mrb[158].mxu1  ;;  %v2783_v48 = vadd.f32 %v4117_v17, %v5127_v27  ;;  %v2774_v56 = vpop.f32.mrb[163].mxu0  ;;  %v2900_v44 = vmax.f32 %v2780_v42, 0.0 }
 0x2e2   : > { %v3952_v22 = vpop.f32.mrb[159].mxu1  ;;  %v2775_v50 = vadd.f32 %v2774_v56, %v5121_v53  ;;  %v2898_v29 = vmax.f32 %v2772_v43, 0.0 }
 0x2e3   : > { %v2901_v4 = vmax.f32 %v2783_v48, 0.0  ;;  %v3953_v7 = vadd.f32 %v3952_v22, %v3951_v39  ;;  %v5211_v12 = vadd.f32 %v3950_v24, %v2570_v59 }
 0x2e4   : > { %v2899_v45 = vmax.f32 %v2775_v50, 0.0 }
 0x2e5   : > { %v2931_v21 = vpack.c.bf16 %v2901_v4, %v2900_v44  ;;  %v5213_v31 = vadd.f32 %v3953_v7, %v2573_v30 }
 0x2e6   : > { %v2930_v60 = vpack.c.bf16 %v2899_v45, %v2898_v29  ;;  %v4120_v35 = vpop.f32.mrb[164].mxu0 }
 0x2e7   : > { %v2796_v20 = vadd.f32 %v4120_v35, %v5136_v46  ;;  %v2787_v47 = vpop.f32.mrb[165].mxu0 }
 0x2e8   : > { %v2788_v27 = vadd.f32 %v2787_v47, %v5130_v55  ;;  %v4121_v63 = vpop.f32.mrb[166].mxu0  ;;  %4162 = vmatprep.mubr.bf16.mxu1 %v2930_v60 }
 0x2e9   : > { %v2799_v53 = vadd.f32 %v4121_v63, %v5139_v10  ;;  %v2790_v42 = vpop.f32.mrb[167].mxu0  ;;  %4163 = vmatmul.mubr.bf16.vlgmr.msra.gmra.mrb[160].mxu1 %v2931_v21  ;;  %v2904_v11 = vmax.f32 %v2796_v20, 0.0 }
 0x2ea   : > { %v2791_v59 = vadd.f32 %v2790_v42, %v5133_v28  ;;  %v2902_v43 = vmax.f32 %v2788_v27, 0.0 }
 0x2eb   : > { %v2905_v57 = vmax.f32 %v2799_v53, 0.0 }
 0x2ec   : > { %v2903_v30 = vmax.f32 %v2791_v59, 0.0 }
 0x2ed   : > { %v2933_v17 = vpack.c.bf16 %v2905_v57, %v2904_v11 }
 0x2ee   : > { %v2932_v24 = vpack.c.bf16 %v2903_v30, %v2902_v43  ;;  %v4124_v39 = vpop.f32.mrb[168].mxu0 }
 0x2ef   : > { %v2812_v46 = vadd.f32 %v4124_v39, %v5148_v16  ;;  %v2803_v48 = vpop.f32.mrb[169].mxu0 }
 0x2f0   : > { %v2804_v55 = vadd.f32 %v2803_v48, %v5142_v51  ;;  %v4125_v56 = vpop.f32.mrb[170].mxu0  ;;  %4166 = vmatprep.mubr.bf16.mxu1 %v2932_v24 }
 0x2f1   : > { %v2815_v10 = vadd.f32 %v4125_v56, %v5151_v36  ;;  %v2806_v22 = vpop.f32.mrb[171].mxu0  ;;  %4167 = vmatmul.mubr.bf16.gmra.mrb[164].mxu1 %v2933_v17  ;;  %v2908_v50 = vmax.f32 %v2812_v46, 0.0 }
 0x2f2   : > { %v2807_v28 = vadd.f32 %v2806_v22, %v5145_v26  ;;  %v2906_v4 = vmax.f32 %v2804_v55, 0.0 }
 0x2f3   : > { %v2909_v44 = vmax.f32 %v2815_v10, 0.0 }
 0x2f4   : > { %v2907_v7 = vmax.f32 %v2807_v28, 0.0 }
 0x2f5   : > { %v2935_v29 = vpack.c.bf16 %v2909_v44, %v2908_v50 }
 0x2f6   : > { %v2934_v45 = vpack.c.bf16 %v2907_v7, %v2906_v4  ;;  %v4128_v21 = vpop.f32.mrb[172].mxu0 }
 0x2f7   : > { %v2828_v16 = vadd.f32 %v4128_v21, %v5160_v6  ;;  %v2819_v60 = vpop.f32.mrb[173].mxu0 }
 0x2f8   : > { %v2820_v51 = vadd.f32 %v2819_v60, %v5154_v13  ;;  %v4129_v35 = vpop.f32.mrb[174].mxu0  ;;  %4170 = vmatprep.mubr.bf16.mxu1 %v2934_v45 }
 0x2f9   : > { %v2831_v36 = vadd.f32 %v4129_v35, %v5163_v33  ;;  %v2822_v20 = vpop.f32.mrb[175].mxu0  ;;  %4171 = vmatmul.mubr.bf16.gmra.mrb[168].mxu1 %v2935_v29  ;;  %v2912_v47 = vmax.f32 %v2828_v16, 0.0 }
 0x2fa   : > { %v2823_v26 = vadd.f32 %v2822_v20, %v5157_v62  ;;  %v2910_v63 = vmax.f32 %v2820_v51, 0.0 }
 0x2fb   : > { %v2913_v27 = vmax.f32 %v2831_v36, 0.0 }
 0x2fc   : > { %v2911_v53 = vmax.f32 %v2823_v26, 0.0 }
 0x2fd   : > { %v2937_v42 = vpack.c.bf16 %v2913_v27, %v2912_v47 }
 0x2fe   : > { %v2936_v59 = vpack.c.bf16 %v2911_v53, %v2910_v63  ;;  %v4132_v11 = vpop.f32.mrb[176].mxu0 }
 0x2ff   : > { %v2844_v6 = vadd.f32 %v4132_v11, %v5172_v19  ;;  %v2835_v57 = vpop.f32.mrb[177].mxu0 }
 0x300   : > { %v2836_v13 = vadd.f32 %v2835_v57, %v5166_v32  ;;  %v4133_v43 = vpop.f32.mrb[178].mxu0  ;;  %4174 = vmatprep.mubr.bf16.mxu1 %v2936_v59 }
 0x301   : > { %v2847_v33 = vadd.f32 %v4133_v43, %v5175_v2  ;;  %v2838_v30 = vpop.f32.mrb[179].mxu0  ;;  %4175 = vmatmul.mubr.bf16.gmra.mrb[172].mxu1 %v2937_v42  ;;  %v2916_v17 = vmax.f32 %v2844_v6, 0.0 }
 0x302   : > { %v2839_v62 = vadd.f32 %v2838_v30, %v5169_v58  ;;  %v2914_v39 = vmax.f32 %v2836_v13, 0.0 }
 0x303   : > { %v2917_v24 = vmax.f32 %v2847_v33, 0.0 }
 0x304   : > { %v2915_v46 = vmax.f32 %v2839_v62, 0.0 }
 0x305   : > { %v2939_v48 = vpack.c.bf16 %v2917_v24, %v2916_v17 }
 0x306   : > { %v2938_v55 = vpack.c.bf16 %v2915_v46, %v2914_v39  ;;  %v4136_v56 = vpop.f32.mrb[180].mxu0 }
 0x307   : > { %v2860_v19 = vadd.f32 %v4136_v56, %v5184_v18  ;;  %v2851_v10 = vpop.f32.mrb[181].mxu0 }
 0x308   : > { %v2852_v32 = vadd.f32 %v2851_v10, %v5178_v14  ;;  %v4137_v22 = vpop.f32.mrb[182].mxu0  ;;  %4178 = vmatprep.mubr.bf16.mxu1 %v2938_v55 }
 0x309   : > { %v2863_v2 = vadd.f32 %v4137_v22, %v5187_v40  ;;  %v2854_v28 = vpop.f32.mrb[183].mxu0  ;;  %4179 = vmatmul.mubr.bf16.gmra.mrb[176].mxu1 %v2939_v48  ;;  %v2920_v50 = vmax.f32 %v2860_v19, 0.0 }
 0x30a   : > { %v2855_v58 = vadd.f32 %v2854_v28, %v5181_v3  ;;  %v2918_v4 = vmax.f32 %v2852_v32, 0.0 }
 0x30b   : > { %v2921_v44 = vmax.f32 %v2863_v2, 0.0 }
 0x30c   : > { %v2919_v7 = vmax.f32 %v2855_v58, 0.0 }
 0x30d   : > { %v2941_v29 = vpack.c.bf16 %v2921_v44, %v2920_v50 }
 0x30e   : > { %v2940_v45 = vpack.c.bf16 %v2919_v7, %v2918_v4  ;;  %v4140_v21 = vpop.f32.mrb[184].mxu0 }
 0x30f   : > { %v2876_v18 = vadd.f32 %v4140_v21, %v5196_v15  ;;  %v2867_v16 = vpop.f32.mrb[185].mxu0 }
 0x310   : > { %v2868_v14 = vadd.f32 %v2867_v16, %v5190_v8  ;;  %v4141_v60 = vpop.f32.mrb[186].mxu0  ;;  %4182 = vmatprep.mubr.bf16.mxu1 %v2940_v45 }
 0x311   : > { %v2879_v40 = vadd.f32 %v4141_v60, %v5199_v49  ;;  %v2870_v51 = vpop.f32.mrb[187].mxu0  ;;  %4183 = vmatmul.mubr.bf16.gmra.mrb[180].mxu1 %v2941_v29  ;;  %v2924_v35 = vmax.f32 %v2876_v18, 0.0 }
 0x312   : > { %v2871_v3 = vadd.f32 %v2870_v51, %v5193_v54  ;;  %v2922_v20 = vmax.f32 %v2868_v14, 0.0 }
 0x313   : > { %v2925_v36 = vmax.f32 %v2879_v40, 0.0 }
 0x314   : > { %v2923_v26 = vmax.f32 %v2871_v3, 0.0 }
 0x315   : > { %v2943_v47 = vpack.c.bf16 %v2925_v36, %v2924_v35 }
 0x316   : > { %v2942_v27 = vpack.c.bf16 %v2923_v26, %v2922_v20  ;;  %v4144_v63 = vpop.f32.mrb[188].mxu0 }
 0x317   : > { %v2892_v15 = vadd.f32 %v4144_v63, %v5211_v12  ;;  %v2883_v53 = vpop.f32.mrb[189].mxu0  ;;  %v5251_v12 = vld [vmem:[%s5396_s6] ss:$0 sm:$0xff] }
 0x318   : > { %v2884_v8 = vadd.f32 %v2883_v53, %v5202_v61  ;;  %v4145_v42 = vpop.f32.mrb[190].mxu0  ;;  %4186 = vmatprep.mubr.bf16.mxu1 %v2942_v27  ;;  %v5246_v61 = vld [vmem:[%s5398_s8] ss:$0 sm:$0xff] }
 0x319   : > { %v2895_v49 = vadd.f32 %v4145_v42, %v5213_v31  ;;  %v2886_v59 = vpop.f32.mrb[191].mxu0  ;;  %4187 = vmatmul.mubr.bf16.gmra.mrb[184].mxu1 %v2943_v47  ;;  %v2928_v11 = vmax.f32 %v2892_v15, 0.0  ;;  %v568_v31 = vadd.f32 %v5246_v61, %v4676_v34  ;;  %v579_v62 = vadd.f32 %v4683_v38, %v5246_v61 }
 0x31a   : > { %v2887_v54 = vadd.f32 %v2886_v59, %v5205_v1  ;;  %v2926_v57 = vmax.f32 %v2884_v8, 0.0  ;;  %v576_v1 = vadd.f32 %v4664_v23, %v5246_v61  ;;  %v571_v39 = vadd.f32 %v5246_v61, %v4688_v41 }
 0x31b   : > { %v2929_v6 = vmax.f32 %v2895_v49, 0.0  ;;  %v694_v34 = vmax.f32 %v568_v31, 0.0  ;;  %v697_v10 = vmax.f32 %v579_v62, 0.0  ;;  %v592_v50 = vadd.f32 %v4697_v52, %v5246_v61  ;;  %v5422_v49 = vld [vmem:[#allocation3_spill] sm:$0xff] }
 0x31c   : > { %v2927_v13 = vmax.f32 %v2887_v54, 0.0  ;;  %v696_v55 = vmax.f32 %v576_v1, 0.0  ;;  %v695_v2 = vmax.f32 %v571_v39, 0.0  ;;  %v584_v4 = vadd.f32 %v5246_v61, %v4712_v0 }
 0x31d   : > { %v2945_v43 = vpack.c.bf16 %v2929_v6, %v2928_v11  ;;  %v595_v45 = vadd.f32 %v4719_v5, %v5246_v61  ;;  %v587_v16 = vadd.f32 %v5246_v61, %v4724_v9  ;;  %v700_v60 = vmax.f32 %v592_v50, 0.0  ;;  %v5423_v6 = vld [vmem:[#allocation4_spill] sm:$0xff] }
 0x31e   : > { %v2944_v33 = vpack.c.bf16 %v2927_v13, %v2926_v57  ;;  %v698_v3 = vmax.f32 %v584_v4, 0.0  ;;  %v608_v63 = vadd.f32 %v4739_v25, %v5246_v61  ;;  %v600_v53 = vadd.f32 %v5246_v61, %v4752_v37 }
 0x31f   : > { %v701_v36 = vmax.f32 %v595_v45, 0.0  ;;  %v699_v9 = vmax.f32 %v587_v16, 0.0  ;;  %v611_v59 = vadd.f32 %v5422_v49, %v5246_v61  ;;  %v603_v57 = vadd.f32 %v5246_v61, %v5423_v6 }
 0x320   : > { %4190 = vmatprep.mubr.bf16.mxu1 %v2944_v33  ;;  %v702_v31 = vmax.f32 %v600_v53, 0.0 }
 0x321   : > { %4191 = vmatmul.mubr.bf16.gmra.mrb[188].mxu1 %v2945_v43  ;;  %v704_v43 = vmax.f32 %v608_v63, 0.0 }
 0x3bc   : > { %v4164_v30 = vpop.f32.mrb[160].mxu1 }
 0x3bd   : > { %v3060_v17 = vadd.f32 %v4164_v30, %v5251_v12  ;;  %v3051_v24 = vpop.f32.mrb[161].mxu1 }
 0x3be   : > { %v3052_v46 = vadd.f32 %v5251_v12, %v3051_v24  ;;  %v4165_v48 = vpop.f32.mrb[162].mxu1 }
 0x3bf   : > { %v3180_v56 = vmax.f32 %v3060_v17, 0.0  ;;  %v3063_v23 = vadd.f32 %v4165_v48, %v5251_v12  ;;  %v3054_v19 = vpop.f32.mrb[163].mxu1  ;;  %v705_v17 = vmax.f32 %v611_v59, 0.0 }
 0x3c0   : > { %v3178_v38 = vmax.f32 %v3052_v46, 0.0  ;;  %v3055_v41 = vadd.f32 %v5251_v12, %v3054_v19  ;;  %v703_v46 = vmax.f32 %v603_v57, 0.0 }
 0x3c1   : > { %v3212_v32 = vadd.f32 %v3180_v56, %v696_v55  ;;  %v3181_v22 = vmax.f32 %v3063_v23, 0.0  ;;  %v5424_v56 = vld [vmem:[#allocation5_spill] sm:$0xff] }
 0x3c2   : > { %v3210_v28 = vadd.f32 %v3178_v38, %v694_v34  ;;  %v3179_v58 = vmax.f32 %v3055_v41, 0.0  ;;  %v624_v23 = vadd.f32 %v5424_v56, %v5246_v61  ;;  %v5425_v34 = vld [vmem:[#allocation6_spill] sm:$0xff] }
 0x3c3   : > { %3244 = vst [vmem:[%s5268_s12 + $0x10] sm:$0xff] %v3212_v32  ;;  %v3213_v44 = vadd.f32 %v3181_v22, %v697_v10  ;;  %v616_v38 = vadd.f32 %v5246_v61, %v5425_v34  ;;  %v5426_v32 = vld [vmem:[#allocation7_spill] sm:$0xff] }
 0x3c4   : > { %3242 = vst [vmem:[%s5268_s12] sm:$0xff] %v3210_v28  ;;  %v3211_v7 = vadd.f32 %v3179_v58, %v695_v2  ;;  %v4168_v29 = vpop.f32.mrb[164].mxu1  ;;  %v627_v22 = vadd.f32 %v5426_v32, %v5246_v61  ;;  %v5427_v58 = vld [vmem:[#allocation8_spill] sm:$0xff] }
 0x3c5   : > { %3245 = vst [vmem:[%s5268_s12 + $0x18] sm:$0xff] %v3213_v44  ;;  %v3076_v21 = vadd.f32 %v4168_v29, %v5251_v12  ;;  %v3067_v18 = vpop.f32.mrb[165].mxu1  ;;  %v619_v50 = vadd.f32 %v5246_v61, %v5427_v58 }
 0x3c6   : > { %3243 = vst [vmem:[%s5268_s12 + $0x8] sm:$0xff] %v3211_v7  ;;  %v3068_v52 = vadd.f32 %v5251_v12, %v3067_v18  ;;  %v4169_v14 = vpop.f32.mrb[166].mxu1  ;;  %v708_v7 = vmax.f32 %v624_v23, 0.0  ;;  %v706_v18 = vmax.f32 %v616_v38, 0.0  ;;  %v5434_v23 = vld [vmem:[#allocation15_spill] sm:$0xff] }
 0x3c7   : > { %v3184_v0 = vmax.f32 %v3076_v21, 0.0  ;;  %v3079_v40 = vadd.f32 %v4169_v14, %v5251_v12  ;;  %v3070_v51 = vpop.f32.mrb[167].mxu1  ;;  %v709_v14 = vmax.f32 %v627_v22, 0.0 }
 0x3c8   : > { %v3182_v5 = vmax.f32 %v3068_v52, 0.0  ;;  %v3071_v35 = vadd.f32 %v5251_v12, %v3070_v51 }
 0x3c9   : > { %v3216_v20 = vadd.f32 %v3184_v0, %v700_v60  ;;  %v3185_v26 = vmax.f32 %v3079_v40, 0.0  ;;  %v707_v40 = vmax.f32 %v619_v50, 0.0 }
 0x3ca   : > { %v3214_v47 = vadd.f32 %v3182_v5, %v698_v3  ;;  %v3183_v27 = vmax.f32 %v3071_v35, 0.0  ;;  %v5428_v5 = vld [vmem:[#allocation9_spill] sm:$0xff] }
 0x3cb   : > { %3248 = vst [vmem:[%s5268_s12 + $0x30] sm:$0xff] %v3216_v20  ;;  %v3217_v15 = vadd.f32 %v3185_v26, %v701_v36  ;;  %v640_v35 = vadd.f32 %v5428_v5, %v5246_v61  ;;  %v5429_v20 = vld [vmem:[#allocation10_spill] sm:$0xff] }
 0x3cc   : > { %3246 = vst [vmem:[%s5268_s12 + $0x20] sm:$0xff] %v3214_v47  ;;  %v3215_v8 = vadd.f32 %v3183_v27, %v699_v9  ;;  %v4172_v42 = vpop.f32.mrb[168].mxu1  ;;  %v632_v26 = vadd.f32 %v5246_v61, %v5429_v20  ;;  %v5430_v27 = vld [vmem:[#allocation11_spill] sm:$0xff] }
 0x3cd   : > { %3249 = vst [vmem:[%s5268_s12 + $0x38] sm:$0xff] %v3217_v15  ;;  %v3092_v54 = vadd.f32 %v4172_v42, %v5251_v12  ;;  %v3083_v11 = vpop.f32.mrb[169].mxu1  ;;  %v643_v63 = vadd.f32 %v5430_v27, %v5246_v61 }
 0x3ce   : > { %3247 = vst [vmem:[%s5268_s12 + $0x28] sm:$0xff] %v3215_v8  ;;  %v3084_v25 = vadd.f32 %v5251_v12, %v3083_v11  ;;  %v4173_v13 = vpop.f32.mrb[170].mxu1  ;;  %v5431_v8 = vld [vmem:[#allocation12_spill] sm:$0xff] }
 0x3cf   : > { %v3188_v37 = vmax.f32 %v3092_v54, 0.0  ;;  %v3095_v33 = vadd.f32 %v4173_v13, %v5251_v12  ;;  %v3086_v1 = vpop.f32.mrb[171].mxu1  ;;  %v635_v42 = vadd.f32 %v5246_v61, %v5431_v8  ;;  %v712_v54 = vmax.f32 %v640_v35, 0.0  ;;  %v5438_v35 = vld [vmem:[#allocation19_spill] sm:$0xff] }
 0x3d0   : > { %v3186_v30 = vmax.f32 %v3084_v25, 0.0  ;;  %v3087_v62 = vadd.f32 %v5251_v12, %v3086_v1  ;;  %v710_v25 = vmax.f32 %v632_v26, 0.0 }
 0x3d1   : > { %v3220_v24 = vadd.f32 %v3188_v37, %v704_v43  ;;  %v3189_v39 = vmax.f32 %v3095_v33, 0.0  ;;  %v713_v37 = vmax.f32 %v643_v63, 0.0 }
 0x3d2   : > { %v3218_v48 = vadd.f32 %v3186_v30, %v702_v31  ;;  %v3187_v55 = vmax.f32 %v3087_v62, 0.0  ;;  %v711_v31 = vmax.f32 %v635_v42, 0.0 }
 0x3d3   : > { %3252 = vst [vmem:[%s5268_s12 + $0x50] sm:$0xff] %v3220_v24  ;;  %v3221_v19 = vadd.f32 %v3189_v39, %v705_v17  ;;  %v5432_v17 = vld [vmem:[#allocation13_spill] sm:$0xff] }
 0x3d4   : > { %3250 = vst [vmem:[%s5268_s12 + $0x40] sm:$0xff] %v3218_v48  ;;  %v3219_v41 = vadd.f32 %v3187_v55, %v703_v46  ;;  %v4176_v10 = vpop.f32.mrb[172].mxu1  ;;  %v656_v24 = vadd.f32 %v5432_v17, %v5246_v61  ;;  %v5433_v46 = vld [vmem:[#allocation14_spill] sm:$0xff] }
 0x3d5   : > { %3253 = vst [vmem:[%s5268_s12 + $0x58] sm:$0xff] %v3221_v19  ;;  %v3108_v2 = vadd.f32 %v4176_v10, %v5251_v12  ;;  %v3099_v28 = vpop.f32.mrb[173].mxu1  ;;  %v648_v48 = vadd.f32 %v5246_v61, %v5433_v46  ;;  %v659_v19 = vadd.f32 %v5434_v23, %v5246_v61 }
 0x3d6   : > { %3251 = vst [vmem:[%s5268_s12 + $0x48] sm:$0xff] %v3219_v41  ;;  %v3100_v44 = vadd.f32 %v5251_v12, %v3099_v28  ;;  %v4177_v4 = vpop.f32.mrb[174].mxu1  ;;  %v5435_v41 = vld [vmem:[#allocation16_spill] sm:$0xff] }
 0x3d7   : > { %v3192_v29 = vmax.f32 %v3108_v2, 0.0  ;;  %v3111_v45 = vadd.f32 %v4177_v4, %v5251_v12  ;;  %v3102_v21 = vpop.f32.mrb[175].mxu1  ;;  %v651_v10 = vadd.f32 %v5246_v61, %v5435_v41  ;;  %v716_v2 = vmax.f32 %v656_v24, 0.0  ;;  %v5442_v24 = vld [vmem:[#allocation23_spill] sm:$0xff] }
 0x3d8   : > { %v3190_v16 = vmax.f32 %v3100_v44, 0.0  ;;  %v3103_v52 = vadd.f32 %v5251_v12, %v3102_v21  ;;  %v714_v44 = vmax.f32 %v648_v48, 0.0 }
 0x3d9   : > { %v3224_v60 = vadd.f32 %v3192_v29, %v708_v7  ;;  %v3193_v0 = vmax.f32 %v3111_v45, 0.0  ;;  %v717_v29 = vmax.f32 %v659_v19, 0.0 }
 0x3da   : > { %v3222_v51 = vadd.f32 %v3190_v16, %v706_v18  ;;  %v3191_v3 = vmax.f32 %v3103_v52, 0.0  ;;  %v715_v18 = vmax.f32 %v651_v10, 0.0 }
 0x3db   : > { %3256 = vst [vmem:[%s5268_s12 + $0x70] sm:$0xff] %v3224_v60  ;;  %v3225_v36 = vadd.f32 %v3193_v0, %v709_v14  ;;  %v5436_v14 = vld [vmem:[#allocation17_spill] sm:$0xff] }
 0x3dc   : > { %3254 = vst [vmem:[%s5268_s12 + $0x60] sm:$0xff] %v3222_v51  ;;  %v3223_v9 = vadd.f32 %v3191_v3, %v707_v40  ;;  %v4180_v47 = vpop.f32.mrb[176].mxu1  ;;  %v672_v60 = vadd.f32 %v5436_v14, %v5246_v61  ;;  %v5437_v40 = vld [vmem:[#allocation18_spill] sm:$0xff] }
 0x3dd   : > { %3257 = vst [vmem:[%s5268_s12 + $0x78] sm:$0xff] %v3225_v36  ;;  %v3124_v15 = vadd.f32 %v4180_v47, %v5251_v12  ;;  %v3115_v53 = vpop.f32.mrb[177].mxu1  ;;  %v664_v51 = vadd.f32 %v5246_v61, %v5437_v40  ;;  %v675_v36 = vadd.f32 %v5438_v35, %v5246_v61 }
 0x3de   : > { %3255 = vst [vmem:[%s5268_s12 + $0x68] sm:$0xff] %v3223_v9  ;;  %v3116_v49 = vadd.f32 %v5251_v12, %v3115_v53  ;;  %v4181_v59 = vpop.f32.mrb[178].mxu1  ;;  %v5439_v9 = vld [vmem:[#allocation20_spill] sm:$0xff] }
 0x3df   : > { %v3196_v11 = vmax.f32 %v3124_v15, 0.0  ;;  %v3127_v6 = vadd.f32 %v4181_v59, %v5251_v12  ;;  %v3118_v57 = vpop.f32.mrb[179].mxu1  ;;  %v667_v47 = vadd.f32 %v5246_v61, %v5439_v9  ;;  %v720_v15 = vmax.f32 %v672_v60, 0.0 }
 0x3e0   : > { %v3194_v13 = vmax.f32 %v3116_v49, 0.0  ;;  %v3119_v43 = vadd.f32 %v5251_v12, %v3118_v57  ;;  %v718_v49 = vmax.f32 %v664_v51, 0.0 }
 0x3e1   : > { %v3228_v33 = vadd.f32 %v3196_v11, %v712_v54  ;;  %v3197_v1 = vmax.f32 %v3127_v6, 0.0  ;;  %v721_v11 = vmax.f32 %v675_v36, 0.0 }
 0x3e2   : > { %v3226_v30 = vadd.f32 %v3194_v13, %v710_v25  ;;  %v3195_v62 = vmax.f32 %v3119_v43, 0.0  ;;  %v719_v25 = vmax.f32 %v667_v47, 0.0 }
 0x3e3   : > { %3260 = vst [vmem:[%s5268_s12 + $0x90] sm:$0xff] %v3228_v33  ;;  %v3229_v39 = vadd.f32 %v3197_v1, %v713_v37  ;;  %v5440_v37 = vld [vmem:[#allocation21_spill] sm:$0xff] }
 0x3e4   : > { %3258 = vst [vmem:[%s5268_s12 + $0x80] sm:$0xff] %v3226_v30  ;;  %v3227_v55 = vadd.f32 %v3195_v62, %v711_v31  ;;  %v4184_v56 = vpop.f32.mrb[180].mxu1  ;;  %v688_v33 = vadd.f32 %v5440_v37, %v5246_v61  ;;  %v5441_v31 = vld [vmem:[#allocation22_spill] sm:$0xff] }
 0x3e5   : > { %3261 = vst [vmem:[%s5268_s12 + $0x98] sm:$0xff] %v3229_v39  ;;  %v3140_v34 = vadd.f32 %v4184_v56, %v5251_v12  ;;  %v3131_v38 = vpop.f32.mrb[181].mxu1  ;;  %v680_v30 = vadd.f32 %v5246_v61, %v5441_v31  ;;  %v691_v39 = vadd.f32 %v5442_v24, %v5246_v61 }
 0x3e6   : > { %3259 = vst [vmem:[%s5268_s12 + $0x88] sm:$0xff] %v3227_v55  ;;  %v3132_v32 = vadd.f32 %v5251_v12, %v3131_v38  ;;  %v4185_v22 = vpop.f32.mrb[182].mxu1  ;;  %v5443_v55 = vld [vmem:[#allocation24_spill] sm:$0xff] }
 0x3e7   : > { %v3200_v28 = vmax.f32 %v3140_v34, 0.0  ;;  %v3143_v58 = vadd.f32 %v4185_v22, %v5251_v12  ;;  %v3134_v50 = vpop.f32.mrb[183].mxu1  ;;  %v683_v56 = vadd.f32 %v5246_v61, %v5443_v55  ;;  %v724_v34 = vmax.f32 %v688_v33, 0.0 }
 0x3e8   : > { %v3198_v4 = vmax.f32 %v3132_v32, 0.0  ;;  %v3135_v7 = vadd.f32 %v5251_v12, %v3134_v50  ;;  %v722_v32 = vmax.f32 %v680_v30, 0.0 }
 0x3e9   : > { %v3232_v45 = vadd.f32 %v3200_v28, %v716_v2  ;;  %v3201_v21 = vmax.f32 %v3143_v58, 0.0  ;;  %v725_v28 = vmax.f32 %v691_v39, 0.0  ;;  %v723_v50 = vmax.f32 %v683_v56, 0.0 }
 0x3ea   : > { %v3230_v16 = vadd.f32 %v3198_v4, %v714_v44  ;;  %v3199_v52 = vmax.f32 %v3135_v7, 0.0 }
 0x3eb   : > { %3264 = vst [vmem:[%s5268_s12 + $0xb0] sm:$0xff] %v3232_v45  ;;  %v3233_v0 = vadd.f32 %v3201_v21, %v717_v29 }
 0x3ec   : > { %3262 = vst [vmem:[%s5268_s12 + $0xa0] sm:$0xff] %v3230_v16  ;;  %v3231_v3 = vadd.f32 %v3199_v52, %v715_v18  ;;  %v4188_v5 = vpop.f32.mrb[184].mxu1 }
 0x3ed   : > { %3265 = vst [vmem:[%s5268_s12 + $0xb8] sm:$0xff] %v3233_v0  ;;  %v3156_v20 = vadd.f32 %v4188_v5, %v5251_v12  ;;  %v3147_v26 = vpop.f32.mrb[185].mxu1 }
 0x3ee   : > { %3263 = vst [vmem:[%s5268_s12 + $0xa8] sm:$0xff] %v3231_v3  ;;  %v3148_v27 = vadd.f32 %v5251_v12, %v3147_v26  ;;  %v4189_v63 = vpop.f32.mrb[186].mxu1 }
 0x3ef   : > { %v3204_v53 = vmax.f32 %v3156_v20, 0.0  ;;  %v3159_v8 = vadd.f32 %v4189_v63, %v5251_v12  ;;  %v3150_v42 = vpop.f32.mrb[187].mxu1 }
 0x3f0   : > { %v3202_v59 = vmax.f32 %v3148_v27, 0.0  ;;  %v3151_v54 = vadd.f32 %v5251_v12, %v3150_v42 }
 0x3f1   : > { %v3236_v6 = vadd.f32 %v3204_v53, %v720_v15  ;;  %v3205_v57 = vmax.f32 %v3159_v8, 0.0 }
 0x3f2   : > { %v3234_v13 = vadd.f32 %v3202_v59, %v718_v49  ;;  %v3203_v43 = vmax.f32 %v3151_v54, 0.0 }
 0x3f3   : > { %3268 = vst [vmem:[%s5268_s12 + $0xd0] sm:$0xff] %v3236_v6  ;;  %v3237_v1 = vadd.f32 %v3205_v57, %v721_v11 }
 0x3f4   : > { %3266 = vst [vmem:[%s5268_s12 + $0xc0] sm:$0xff] %v3234_v13  ;;  %v3235_v62 = vadd.f32 %v3203_v43, %v719_v25  ;;  %v4192_v17 = vpop.f32.mrb[188].mxu1 }
 0x3f5   : > { %3269 = vst [vmem:[%s5268_s12 + $0xd8] sm:$0xff] %v3237_v1  ;;  %v3172_v46 = vadd.f32 %v4192_v17, %v5251_v12  ;;  %v3163_v48 = vpop.f32.mrb[189].mxu1 }
 0x3f6   : > { %3267 = vst [vmem:[%s5268_s12 + $0xc8] sm:$0xff] %v3235_v62  ;;  %v3164_v23 = vadd.f32 %v5251_v12, %v3163_v48  ;;  %v4193_v19 = vpop.f32.mrb[190].mxu1 }
 0x3f7   : > { %v3208_v38 = vmax.f32 %v3172_v46, 0.0  ;;  %v3175_v41 = vadd.f32 %v4193_v19, %v5251_v12  ;;  %v3166_v10 = vpop.f32.mrb[191].mxu1 }
 0x3f8   : > { %v3206_v22 = vmax.f32 %v3164_v23, 0.0  ;;  %v3167_v2 = vadd.f32 %v5251_v12, %v3166_v10 }
 0x3f9   : > { %v3240_v58 = vadd.f32 %v3208_v38, %v724_v34  ;;  %v3209_v61 = vmax.f32 %v3175_v41, 0.0 }
 0x3fa   : > { %v3238_v44 = vadd.f32 %v3206_v22, %v722_v32  ;;  %v3207_v4 = vmax.f32 %v3167_v2, 0.0 }
 0x3fb   : > { %3272 = vst [vmem:[%s5268_s12 + $0xf0] sm:$0xff] %v3240_v58  ;;  %v3241_v7 = vadd.f32 %v3209_v61, %v725_v28 }
 0x3fc   : > { %3270 = vst [vmem:[%s5268_s12 + $0xe0] sm:$0xff] %v3238_v44  ;;  %v3239_v29 = vadd.f32 %v3207_v4, %v723_v50 }
 0x3fd   : > { %3273 = vst [vmem:[%s5268_s12 + $0xf8] sm:$0xff] %v3241_v7 }
 0x3fe   : > { %3271 = vst [vmem:[%s5268_s12 + $0xe8] sm:$0xff] %v3239_v29 }
 0x3ff PF: > { %s19_s30 = sadd.s32 1, %s4322_s30  }
 0x400   : > { %p16_p4 = scmp.ge.s32.totalorder %s19_s30, 4  }
 0x402   :  { %18 = sbr.rel (!%p16_p4) target bundleno = 1 (0x1), region = 88 }

</bundles_post_ra>
